<compile_context>
chip_gen: v5e
topology: v5e:2x2
jax: 0.10.0
libtpu: 0.0.40
codegen_flags: <defaults>
</compile_context>

<pallas_src>
import math

import jax
import jax.numpy as jnp
from jax.experimental import pallas as pl
from jax.experimental.pallas import tpu as pltpu

# ---------------- small ViT config (scaled-down google/vit-base) ----------------
IMG = 32            # analogue of input_size = (224, 224)
PATCH = 8           # analogue of patch_size = 16
CIN = 3             # ViT pixel channels
HID = 32            # hidden_size (768 -> 32) == num_channels
NHEAD = 4
DHEAD = HID // NHEAD
DFF = 64            # intermediate_size
NLAYERS = 2
LN_EPS = 1e-12      # HF ViT layer_norm_eps
HP = IMG // PATCH
NPATCH = HP * HP
SEQ = NPATCH + 1    # +1 CLS token
PDIM = CIN * PATCH * PATCH


# =============================== in-kernel helpers ===============================

def _ln(x, g, b):
    mu = jnp.mean(x, axis=-1, keepdims=True)
    var = jnp.mean((x - mu) ** 2, axis=-1, keepdims=True)
    return (x - mu) * jax.lax.rsqrt(var + LN_EPS) * g + b


def _gelu_exact(x):
    return 0.5 * x * (1.0 + jax.lax.erf(x * (1.0 / math.sqrt(2.0))))


# =============================== Pallas kernels ===============================

def _resize_bilinear_kernel(x_ref, l_ref, r_ref, o_ref):
    # separable bilinear resize: out[b] = L @ x[b] @ R^T  (two batched matmuls)
    x = x_ref[...]                                     # (BC, Hin, Win)
    bc = x.shape[0]
    rb = jnp.broadcast_to(r_ref[...][None], (bc,) + r_ref.shape)   # (BC, Wout, Win)
    t = jnp.einsum('bhw,bjw->bhj', x, rb,
                   preferred_element_type=jnp.float32)             # (BC, Hin, Wout)
    lb = jnp.broadcast_to(l_ref[...][None], (bc,) + l_ref.shape)   # (BC, Hout, Hin)
    o_ref[...] = jnp.einsum('bih,bhj->bij', lb, t,
                            preferred_element_type=jnp.float32)    # (BC, Hout, Wout)


def _embed_kernel(patch_ref, w_ref, b_ref, cls_ref, pos_ref, o_ref):
    # patch projection + CLS concat + positional embedding, fused per batch item
    tok = jnp.dot(patch_ref[0], w_ref[...],
                  preferred_element_type=jnp.float32) + b_ref[...]   # (NPATCH, D)
    seq = jnp.concatenate([cls_ref[0], tok], axis=0)                 # (SEQ, D)
    o_ref[0] = seq + pos_ref[0]


def _encoder_stack_kernel(h_ref, ln1_g, ln1_b, qkv_w, qkv_b, ao_w, ao_b,
                          ln2_g, ln2_b, fc1_w, fc1_b, fc2_w, fc2_b,
                          lnf_g, lnf_b, o_ref):
    # grid = (B, NLAYERS); output block is resident across the layer axis, so
    # the activations never round-trip to HBM between layers.
    l = pl.program_id(1)
    n_layers = pl.num_programs(1)

    @pl.when(l == 0)
    def _():
        o_ref[0] = h_ref[0]

    h = o_ref[0]                                        # (S, D), resident in VMEM

    # ---- pre-LN multi-head self-attention with fused QKV projection
    xn = _ln(h, ln1_g[0], ln1_b[0])
    qkv = jnp.dot(xn, qkv_w[0],
                  preferred_element_type=jnp.float32) + qkv_b[0]     # (S, 3D)

    scale = 1.0 / math.sqrt(DHEAD)
    ctx = []
    for hd in range(NHEAD):                             # NHEAD small -> unrolled
        lo = hd * DHEAD
        q = qkv[:, lo:lo + DHEAD]
        k = qkv[:, HID + lo:HID + lo + DHEAD]
        v = qkv[:, 2 * HID + lo:2 * HID + lo + DHEAD]
        s = jax.lax.dot_general(q, k, (((1,), (1,)), ((), ())),
                                preferred_element_type=jnp.float32) * scale
        s = s - jnp.max(s, axis=-1, keepdims=True)
        p = jnp.exp(s)
        p = p * pl.reciprocal(jnp.sum(p, axis=-1, keepdims=True), approx=True)
        ctx.append(jnp.dot(p, v, preferred_element_type=jnp.float32))
    a = jnp.concatenate(ctx, axis=-1)                                # (S, D)
    a = jnp.dot(a, ao_w[0], preferred_element_type=jnp.float32) + ao_b[0]
    h1 = h + a                                                       # residual 1

    # ---- pre-LN MLP
    yn = _ln(h1, ln2_g[0], ln2_b[0])
    y = jnp.dot(yn, fc1_w[0], preferred_element_type=jnp.float32) + fc1_b[0]
    y = _gelu_exact(y)
    y = jnp.dot(y, fc2_w[0], preferred_element_type=jnp.float32) + fc2_b[0]
    h_new = h1 + y                                                   # residual 2

    @pl.when(l < n_layers - 1)
    def _():
        o_ref[0] = h_new

    @pl.when(l == n_layers - 1)                         # fold final LayerNorm in
    def _():
        o_ref[0] = _ln(h_new, lnf_g[...], lnf_b[...])


# =============================== Pallas wrappers ===============================

def _bilinear_matrix(out_size, in_size):
    # PyTorch F.interpolate(mode='bilinear', align_corners=False) weights.
    scale = in_size / out_size
    i = jnp.arange(out_size, dtype=jnp.float32)
    src = jnp.maximum((i + 0.5) * scale - 0.5, 0.0)
    i0 = jnp.minimum(jnp.floor(src).astype(jnp.int32), in_size - 1)
    i1 = jnp.minimum(i0 + 1, in_size - 1)
    w1 = src - i0.astype(jnp.float32)
    w0 = 1.0 - w1
    m = jnp.zeros((out_size, in_size), jnp.float32)
    rows = jnp.arange(out_size)
    m = m.at[rows, i0].add(w0)
    m = m.at[rows, i1].add(w1)
    return m


def resize_bilinear(x, out_h, out_w):
    B, C, H, W = x.shape
    L = _bilinear_matrix(out_h, H)
    R = _bilinear_matrix(out_w, W)
    xf = x.reshape(B * C, H, W)
    out = pl.pallas_call(
        _resize_bilinear_kernel,
        grid=(1,),
        in_specs=[
            pl.BlockSpec((B * C, H, W), lambda i: (0, 0, 0)),
            pl.BlockSpec((out_h, H), lambda i: (0, 0)),
            pl.BlockSpec((out_w, W), lambda i: (0, 0)),
        ],
        out_specs=pl.BlockSpec((B * C, out_h, out_w), lambda i: (0, 0, 0)),
        out_shape=jax.ShapeDtypeStruct((B * C, out_h, out_w), jnp.float32),
    )(xf, L, R)
    return out.reshape(B, C, out_h, out_w)


def resize_nearest_bool(m, out_h, out_w):
    # PyTorch F.interpolate default mode='nearest' on a bool mask:
    # pure gather indexing -> plain JAX glue (no compute hot path).
    B, H, W = m.shape
    hi = (jnp.arange(out_h) * H // out_h).astype(jnp.int32)
    wi = (jnp.arange(out_w) * W // out_w).astype(jnp.int32)
    return m[:, hi][:, :, wi]


def embed_tokens(patches, params):
    B = patches.shape[0]
    return pl.pallas_call(
        _embed_kernel,
        grid=(B,),
        in_specs=[
            pl.BlockSpec((1, NPATCH, PDIM), lambda b: (b, 0, 0)),
            pl.BlockSpec((PDIM, HID), lambda b: (0, 0)),
            pl.BlockSpec((1, HID), lambda b: (0, 0)),
            pl.BlockSpec((1, 1, HID), lambda b: (0, 0, 0)),
            pl.BlockSpec((1, SEQ, HID), lambda b: (0, 0, 0)),
        ],
        out_specs=pl.BlockSpec((1, SEQ, HID), lambda b: (b, 0, 0)),
        out_shape=jax.ShapeDtypeStruct((B, SEQ, HID), jnp.float32),
        compiler_params=pltpu.CompilerParams(dimension_semantics=("parallel",)),
    )(patches, params["patch_w"], params["patch_b"].reshape(1, HID),
      params["cls"], params["pos"])


def encoder_stack(h, params):
    B = h.shape[0]
    w = params["stack"]
    per_layer = lambda b, l: (l, 0, 0)
    full2 = lambda b, l: (0, 0)
    in_specs = [
        pl.BlockSpec((1, SEQ, HID), lambda b, l: (b, 0, 0)),   # h
        pl.BlockSpec((1, 1, HID), per_layer),                  # ln1_g
        pl.BlockSpec((1, 1, HID), per_layer),                  # ln1_b
        pl.BlockSpec((1, HID, 3 * HID), per_layer),            # qkv_w (fused)
        pl.BlockSpec((1, 1, 3 * HID), per_layer),              # qkv_b
        pl.BlockSpec((1, HID, HID), per_layer),                # ao_w
        pl.BlockSpec((1, 1, HID), per_layer),                  # ao_b
        pl.BlockSpec((1, 1, HID), per_layer),                  # ln2_g
        pl.BlockSpec((1, 1, HID), per_layer),                  # ln2_b
        pl.BlockSpec((1, HID, DFF), per_layer),                # fc1_w
        pl.BlockSpec((1, 1, DFF), per_layer),                  # fc1_b
        pl.BlockSpec((1, DFF, HID), per_layer),                # fc2_w
        pl.BlockSpec((1, 1, HID), per_layer),                  # fc2_b
        pl.BlockSpec((1, HID), full2),                         # lnf_g
        pl.BlockSpec((1, HID), full2),                         # lnf_b
    ]
    return pl.pallas_call(
        _encoder_stack_kernel,
        grid=(B, NLAYERS),
        in_specs=in_specs,
        out_specs=pl.BlockSpec((1, SEQ, HID), lambda b, l: (b, 0, 0)),
        out_shape=jax.ShapeDtypeStruct((B, SEQ, HID), jnp.float32),
        compiler_params=pltpu.CompilerParams(
            dimension_semantics=("parallel", "arbitrary")),
    )(h,
      w["ln1_g"], w["ln1_b"], w["qkv_w"], w["qkv_b"], w["ao_w"], w["ao_b"],
      w["ln2_g"], w["ln2_b"], w["fc1_w"], w["fc1_b"], w["fc2_w"], w["fc2_b"],
      params["lnf_g"].reshape(1, HID), params["lnf_b"].reshape(1, HID))


# ================================ ViT forward =================================

def vit_backbone_forward(x, mask, params):
    """x: (B, CIN, H, W) float32 NCHW; mask: (B, H, W) bool."""
    B = x.shape[0]
    # --- F.interpolate(x, size=input_size, mode='bilinear', align_corners=False)
    xr = resize_bilinear(x, IMG, IMG)
    # --- F.interpolate(mask, size=input_size)  (nearest, bool)
    mask_r = resize_nearest_bool(mask, IMG, IMG)

    # --- ViT patch embedding: Conv2d(CIN, HID, k=PATCH, s=PATCH) as matmul
    # (layout-only reshape/transpose kept as JAX glue; projection + CLS + pos
    #  are fused in the embed kernel)
    patches = xr.reshape(B, CIN, HP, PATCH, HP, PATCH)
    patches = patches.transpose(0, 2, 4, 1, 3, 5).reshape(B, NPATCH, PDIM)
    h = embed_tokens(patches, params)                                # (B, S, D)

    # --- transformer encoder (all layers + final LN in one pallas_call)
    h = encoder_stack(h, params)                                     # last_hidden_state

    # --- drop CLS, reshape to (B, HID, Hp, Wp)
    feats = h[:, 1:, :]
    feats = jnp.transpose(feats, (0, 2, 1)).reshape(B, HID, HP, HP)

    # --- mask down to patch grid (nearest)
    out_mask = resize_nearest_bool(mask_r, HP, HP)
    return {"0": (feats, out_mask)}


# ============================ deterministic params ============================

def init_params(key):
    def nrm(k, shape, scale=0.02):
        return scale * jax.random.normal(k, shape, jnp.float32)

    keys = iter(jax.random.split(key, 4 + NLAYERS * 12))
    params = {
        "patch_w": nrm(next(keys), (PDIM, HID)),
        "patch_b": nrm(next(keys), (HID,)),
        "cls":     nrm(next(keys), (1, 1, HID)),
        "pos":     nrm(next(keys), (1, SEQ, HID)),
        "lnf_g":   jnp.ones((HID,), jnp.float32),
        "lnf_b":   jnp.zeros((HID,), jnp.float32),
    }

    acc = {k: [] for k in ("ln1_g", "ln1_b", "qkv_w", "qkv_b", "ao_w", "ao_b",
                           "ln2_g", "ln2_b", "fc1_w", "fc1_b", "fc2_w", "fc2_b")}
    for _ in range(NLAYERS):
        q_w = nrm(next(keys), (HID, HID)); q_b = nrm(next(keys), (HID,))
        k_w = nrm(next(keys), (HID, HID)); k_b = nrm(next(keys), (HID,))
        v_w = nrm(next(keys), (HID, HID)); v_b = nrm(next(keys), (HID,))
        acc["ln1_g"].append(jnp.ones((1, HID), jnp.float32))
        acc["ln1_b"].append(jnp.zeros((1, HID), jnp.float32))
        acc["qkv_w"].append(jnp.concatenate([q_w, k_w, v_w], axis=1))      # (D, 3D)
        acc["qkv_b"].append(jnp.concatenate([q_b, k_b, v_b]).reshape(1, 3 * HID))
        acc["ao_w"].append(nrm(next(keys), (HID, HID)))
        acc["ao_b"].append(nrm(next(keys), (HID,)).reshape(1, HID))
        acc["ln2_g"].append(jnp.ones((1, HID), jnp.float32))
        acc["ln2_b"].append(jnp.zeros((1, HID), jnp.float32))
        acc["fc1_w"].append(nrm(next(keys), (HID, DFF)))
        acc["fc1_b"].append(nrm(next(keys), (DFF,)).reshape(1, DFF))
        acc["fc2_w"].append(nrm(next(keys), (DFF, HID)))
        acc["fc2_b"].append(nrm(next(keys), (HID,)).reshape(1, HID))

    params["stack"] = {k: jnp.stack(v, axis=0) for k, v in acc.items()}
    return params


if __name__ == "__main__":
    key = jax.random.PRNGKey(0)
    k_x, k_m, k_p = jax.random.split(key, 3)

    B, H0, W0 = 2, 16, 16
    x = jax.random.normal(k_x, (B, CIN, H0, W0), jnp.float32)        # NCHW input
    mask = jax.random.uniform(k_m, (B, H0, W0)) > 0.7                # padding mask

    params = init_params(k_p)

    fwd = jax.jit(vit_backbone_forward)
    out = fwd(x, mask, params)
    feats, out_mask = out["0"]
    jax.block_until_ready(feats)
    jax.block_until_ready(out_mask)

    assert feats.shape == (B, HID, HP, HP), feats.shape
    assert out_mask.shape == (B, HP, HP), out_mask.shape
    assert feats.dtype == jnp.float32 and out_mask.dtype == jnp.bool_
    print("KERNEL_OK")
</pallas_src>

<mosaic_0001>
module attributes {stable_mosaic.version = 11 : i64} {
  func.func @_resize_bilinear_kernel(%arg0: i32, %arg1: memref<6x16x16xf32, #tpu.memory_space<vmem>>, %arg2: memref<32x16xf32, #tpu.memory_space<vmem>>, %arg3: memref<32x16xf32, #tpu.memory_space<vmem>>, %arg4: memref<6x32x32xf32, #tpu.memory_space<vmem>>) attributes {dimension_semantics = [#tpu.dimension_semantics<arbitrary>], iteration_bounds = array<i64: 1>, scalar_prefetch = 0 : i64, scratch_operands = 0 : i64, tpu.core_type = #tpu.core_type<tc>, window_params = [{pipeline_mode = #tpu.pipeline_mode<synchronous>, transform_indices = @transform_0, window_bounds = array<i64: 6, 16, 16>}, {pipeline_mode = #tpu.pipeline_mode<synchronous>, transform_indices = @transform_1, window_bounds = array<i64: 32, 16>}, {pipeline_mode = #tpu.pipeline_mode<synchronous>, transform_indices = @transform_2, window_bounds = array<i64: 32, 16>}, {pipeline_mode = #tpu.pipeline_mode<synchronous>, transform_indices = @transform_3, window_bounds = array<i64: 6, 32, 32>}]} {
    %c0 = arith.constant 0 : index
    %c0_0 = arith.constant 0 : index
    %c0_1 = arith.constant 0 : index
    %0 = vector.load %arg1[%c0, %c0_0, %c0_1] : memref<6x16x16xf32, #tpu.memory_space<vmem>>, vector<6x16x16xf32>
    %c0_2 = arith.constant 0 : index
    %c0_3 = arith.constant 0 : index
    %1 = vector.load %arg3[%c0_2, %c0_3] : memref<32x16xf32, #tpu.memory_space<vmem>>, vector<32x16xf32>
    %2 = vector.shape_cast %1 : vector<32x16xf32> to vector<1x32x16xf32>
    %3 = vector.shape_cast %2 : vector<1x32x16xf32> to vector<1x32x16xf32>
    %4 = vector.broadcast %3 : vector<1x32x16xf32> to vector<6x32x16xf32>
    "tpu.trace_start"() <{level = 10 : i32, message = "bhw,bjw->bhj"}> : () -> ()
    %cst = arith.constant dense<0.000000e+00> : vector<6x16x32xf32>
    %5 = tpu.matmul %0, %4, %cst {dimension_numbers = #tpu.dot_dimension_numbers<[2], [2], [1], [1], [0, 0, 0, 1, 1, 1], [0], [0]>} : vector<6x16x16xf32>, vector<6x32x16xf32>, vector<6x16x32xf32> -> vector<6x16x32xf32>
    "tpu.trace_stop"() : () -> ()
    %c0_4 = arith.constant 0 : index
    %c0_5 = arith.constant 0 : index
    %6 = vector.load %arg2[%c0_4, %c0_5] : memref<32x16xf32, #tpu.memory_space<vmem>>, vector<32x16xf32>
    %7 = vector.shape_cast %6 : vector<32x16xf32> to vector<1x32x16xf32>
    %8 = vector.shape_cast %7 : vector<1x32x16xf32> to vector<1x32x16xf32>
    %9 = vector.broadcast %8 : vector<1x32x16xf32> to vector<6x32x16xf32>
    "tpu.trace_start"() <{level = 10 : i32, message = "bih,bhj->bij"}> : () -> ()
    %cst_6 = arith.constant dense<0.000000e+00> : vector<6x32x32xf32>
    %10 = tpu.matmul %9, %5, %cst_6 {dimension_numbers = #tpu.dot_dimension_numbers<[2], [1], [1], [2], [0, 0, 0, 1, 1, 2], [0], [0]>} : vector<6x32x16xf32>, vector<6x16x32xf32>, vector<6x32x32xf32> -> vector<6x32x32xf32>
    "tpu.trace_stop"() : () -> ()
    %c0_7 = arith.constant 0 : index
    %c0_8 = arith.constant 0 : index
    %c0_9 = arith.constant 0 : index
    %11 = vector.load %arg4[%c0_7, %c0_8, %c0_9] : memref<6x32x32xf32, #tpu.memory_space<vmem>>, vector<6x32x32xf32>
    tpu.vector_store %arg4[%c0_7, %c0_8, %c0_9], %10 {strides = array<i32>} : memref<6x32x32xf32, #tpu.memory_space<vmem>>, vector<6x32x32xf32>,
    return
  }
  func.func @transform_0(%arg0: i32) -> (i32, i32, i32) {
    %c0_i32 = arith.constant 0 : i32
    %c0_i32_0 = arith.constant 0 : i32
    %c0_i32_1 = arith.constant 0 : i32
    %c0_i32_2 = arith.constant 0 : i32
    return %c0_i32, %c0_i32_0, %c0_i32_1 : i32, i32, i32
  }
  func.func @transform_1(%arg0: i32) -> (i32, i32) {
    %c0_i32 = arith.constant 0 : i32
    %c0_i32_0 = arith.constant 0 : i32
    %c0_i32_1 = arith.constant 0 : i32
    return %c0_i32, %c0_i32_0 : i32, i32
  }
  func.func @transform_2(%arg0: i32) -> (i32, i32) {
    %c0_i32 = arith.constant 0 : i32
    %c0_i32_0 = arith.constant 0 : i32
    %c0_i32_1 = arith.constant 0 : i32
    return %c0_i32, %c0_i32_0 : i32, i32
  }
  func.func @transform_3(%arg0: i32) -> (i32, i32, i32) {
    %c0_i32 = arith.constant 0 : i32
    %c0_i32_0 = arith.constant 0 : i32
    %c0_i32_1 = arith.constant 0 : i32
    %c0_i32_2 = arith.constant 0 : i32
    return %c0_i32, %c0_i32_0, %c0_i32_1 : i32, i32, i32
  }
}

module attributes {stable_mosaic.version = 11 : i64} {
  func.func @_embed_kernel(%arg0: i32, %arg1: memref<1x16x192xf32, #tpu.memory_space<vmem>>, %arg2: memref<192x32xf32, #tpu.memory_space<vmem>>, %arg3: memref<1x32xf32, #tpu.memory_space<vmem>>, %arg4: memref<1x1x32xf32, #tpu.memory_space<vmem>>, %arg5: memref<1x17x32xf32, #tpu.memory_space<vmem>>, %arg6: memref<1x17x32xf32, #tpu.memory_space<vmem>>) attributes {dimension_semantics = [#tpu.dimension_semantics<parallel>], iteration_bounds = array<i64: 2>, scalar_prefetch = 0 : i64, scratch_operands = 0 : i64, tpu.core_type = #tpu.core_type<tc>, window_params = [{transform_indices = @transform_0, window_bounds = array<i64: 1, 16, 192>}, {pipeline_mode = #tpu.pipeline_mode<synchronous>, transform_indices = @transform_1, window_bounds = array<i64: 192, 32>}, {pipeline_mode = #tpu.pipeline_mode<synchronous>, transform_indices = @transform_2, window_bounds = array<i64: 1, 32>}, {pipeline_mode = #tpu.pipeline_mode<synchronous>, transform_indices = @transform_3, window_bounds = array<i64: 1, 1, 32>}, {pipeline_mode = #tpu.pipeline_mode<synchronous>, transform_indices = @transform_4, window_bounds = array<i64: 1, 17, 32>}, {transform_indices = @transform_5, window_bounds = array<i64: 1, 17, 32>}]} {
    %c0 = arith.constant 0 : index
    %c0_0 = arith.constant 0 : index
    %c0_1 = arith.constant 0 : index
    %0 = vector.load %arg1[%c0, %c0_0, %c0_1] : memref<1x16x192xf32, #tpu.memory_space<vmem>>, vector<1x16x192xf32>
    %1 = vector.shape_cast %0 : vector<1x16x192xf32> to vector<16x192xf32>
    %c0_2 = arith.constant 0 : index
    %c0_3 = arith.constant 0 : index
    %2 = vector.load %arg2[%c0_2, %c0_3] : memref<192x32xf32, #tpu.memory_space<vmem>>, vector<192x32xf32>
    %cst = arith.constant dense<0.000000e+00> : vector<16x32xf32>
    %3 = tpu.matmul %1, %2, %cst {dimension_numbers = #tpu.dot_dimension_numbers<[1], [0], [0], [1], [0, 0, 1, 1], [], []>} : vector<16x192xf32>, vector<192x32xf32>, vector<16x32xf32> -> vector<16x32xf32>
    %c0_4 = arith.constant 0 : index
    %c0_5 = arith.constant 0 : index
    %4 = vector.load %arg3[%c0_4, %c0_5] : memref<1x32xf32, #tpu.memory_space<vmem>>, vector<1x32xf32>
    %5 = vector.broadcast %4 : vector<1x32xf32> to vector<16x32xf32>
    %6 = arith.addf %3, %5 : vector<16x32xf32>
    %c0_6 = arith.constant 0 : index
    %c0_7 = arith.constant 0 : index
    %c0_8 = arith.constant 0 : index
    %7 = vector.load %arg4[%c0_6, %c0_7, %c0_8] : memref<1x1x32xf32, #tpu.memory_space<vmem>>, vector<1x1x32xf32>
    %8 = vector.shape_cast %7 : vector<1x1x32xf32> to vector<1x32xf32>
    %9 = tpu.concatenate %8, %6 in 0 : vector<1x32xf32>, vector<16x32xf32> -> vector<17x32xf32>
    %c0_9 = arith.constant 0 : index
    %c0_10 = arith.constant 0 : index
    %c0_11 = arith.constant 0 : index
    %10 = vector.load %arg5[%c0_9, %c0_10, %c0_11] : memref<1x17x32xf32, #tpu.memory_space<vmem>>, vector<1x17x32xf32>
    %11 = vector.shape_cast %10 : vector<1x17x32xf32> to vector<17x32xf32>
    %12 = arith.addf %9, %11 : vector<17x32xf32>
    %c0_12 = arith.constant 0 : index
    %c0_13 = arith.constant 0 : index
    %c0_14 = arith.constant 0 : index
    %13 = vector.load %arg6[%c0_12, %c0_13, %c0_14] : memref<1x17x32xf32, #tpu.memory_space<vmem>>, vector<1x17x32xf32>
    %14 = vector.shape_cast %13 : vector<1x17x32xf32> to vector<17x32xf32>
    %15 = vector.shape_cast %12 : vector<17x32xf32> to vector<1x17x32xf32>
    tpu.vector_store %arg6[%c0_12, %c0_13, %c0_14], %15 {strides = array<i32>} : memref<1x17x32xf32, #tpu.memory_space<vmem>>, vector<1x17x32xf32>,
    return
  }
  func.func @transform_0(%arg0: i32) -> (i32, i32, i32) {
    %c0_i32 = arith.constant 0 : i32
    %c0_i32_0 = arith.constant 0 : i32
    %c0_i32_1 = arith.constant 0 : i32
    return %arg0, %c0_i32, %c0_i32_0 : i32, i32, i32
  }
  func.func @transform_1(%arg0: i32) -> (i32, i32) {
    %c0_i32 = arith.constant 0 : i32
    %c0_i32_0 = arith.constant 0 : i32
    %c0_i32_1 = arith.constant 0 : i32
    return %c0_i32, %c0_i32_0 : i32, i32
  }
  func.func @transform_2(%arg0: i32) -> (i32, i32) {
    %c0_i32 = arith.constant 0 : i32
    %c0_i32_0 = arith.constant 0 : i32
    %c0_i32_1 = arith.constant 0 : i32
    return %c0_i32, %c0_i32_0 : i32, i32
  }
  func.func @transform_3(%arg0: i32) -> (i32, i32, i32) {
    %c0_i32 = arith.constant 0 : i32
    %c0_i32_0 = arith.constant 0 : i32
    %c0_i32_1 = arith.constant 0 : i32
    %c0_i32_2 = arith.constant 0 : i32
    return %c0_i32, %c0_i32_0, %c0_i32_1 : i32, i32, i32
  }
  func.func @transform_4(%arg0: i32) -> (i32, i32, i32) {
    %c0_i32 = arith.constant 0 : i32
    %c0_i32_0 = arith.constant 0 : i32
    %c0_i32_1 = arith.constant 0 : i32
    %c0_i32_2 = arith.constant 0 : i32
    return %c0_i32, %c0_i32_0, %c0_i32_1 : i32, i32, i32
  }
  func.func @transform_5(%arg0: i32) -> (i32, i32, i32) {
    %c0_i32 = arith.constant 0 : i32
    %c0_i32_0 = arith.constant 0 : i32
    %c0_i32_1 = arith.constant 0 : i32
    return %arg0, %c0_i32, %c0_i32_0 : i32, i32, i32
  }
}

module attributes {stable_mosaic.version = 11 : i64} {
  func.func @_encoder_stack_kernel(%arg0: i32, %arg1: i32, %arg2: memref<1x17x32xf32, #tpu.memory_space<vmem>>, %arg3: memref<1x1x32xf32, #tpu.memory_space<vmem>>, %arg4: memref<1x1x32xf32, #tpu.memory_space<vmem>>, %arg5: memref<1x32x96xf32, #tpu.memory_space<vmem>>, %arg6: memref<1x1x96xf32, #tpu.memory_space<vmem>>, %arg7: memref<1x32x32xf32, #tpu.memory_space<vmem>>, %arg8: memref<1x1x32xf32, #tpu.memory_space<vmem>>, %arg9: memref<1x1x32xf32, #tpu.memory_space<vmem>>, %arg10: memref<1x1x32xf32, #tpu.memory_space<vmem>>, %arg11: memref<1x32x64xf32, #tpu.memory_space<vmem>>, %arg12: memref<1x1x64xf32, #tpu.memory_space<vmem>>, %arg13: memref<1x64x32xf32, #tpu.memory_space<vmem>>, %arg14: memref<1x1x32xf32, #tpu.memory_space<vmem>>, %arg15: memref<1x32xf32, #tpu.memory_space<vmem>>, %arg16: memref<1x32xf32, #tpu.memory_space<vmem>>, %arg17: memref<1x17x32xf32, #tpu.memory_space<vmem>>) attributes {dimension_semantics = [#tpu.dimension_semantics<parallel>, #tpu.dimension_semantics<arbitrary>], iteration_bounds = array<i64: 2, 2>, scalar_prefetch = 0 : i64, scratch_operands = 0 : i64, tpu.core_type = #tpu.core_type<tc>, window_params = [{transform_indices = @transform_0, window_bounds = array<i64: 1, 17, 32>}, {transform_indices = @transform_1, window_bounds = array<i64: 1, 1, 32>}, {transform_indices = @transform_2, window_bounds = array<i64: 1, 1, 32>}, {transform_indices = @transform_3, window_bounds = array<i64: 1, 32, 96>}, {transform_indices = @transform_4, window_bounds = array<i64: 1, 1, 96>}, {transform_indices = @transform_5, window_bounds = array<i64: 1, 32, 32>}, {transform_indices = @transform_6, window_bounds = array<i64: 1, 1, 32>}, {transform_indices = @transform_7, window_bounds = array<i64: 1, 1, 32>}, {transform_indices = @transform_8, window_bounds = array<i64: 1, 1, 32>}, {transform_indices = @transform_9, window_bounds = array<i64: 1, 32, 64>}, {transform_indices = @transform_10, window_bounds = array<i64: 1, 1, 64>}, {transform_indices = @transform_11, window_bounds = array<i64: 1, 64, 32>}, {transform_indices = @transform_12, window_bounds = array<i64: 1, 1, 32>}, {pipeline_mode = #tpu.pipeline_mode<synchronous>, transform_indices = @transform_13, window_bounds = array<i64: 1, 32>}, {pipeline_mode = #tpu.pipeline_mode<synchronous>, transform_indices = @transform_14, window_bounds = array<i64: 1, 32>}, {transform_indices = @transform_15, window_bounds = array<i64: 1, 17, 32>}]} {
    %c0_i32 = arith.constant 0 : i32
    %0 = arith.cmpi eq, %arg1, %c0_i32 : i32
    %1 = arith.extui %0 : i1 to i32
    %c0_i32_0 = arith.constant 0 : i32
    %2 = arith.cmpi ne, %1, %c0_i32_0 : i32
    scf.if %2 {
      %c0_78 = arith.constant 0 : index
      %c0_79 = arith.constant 0 : index
      %c0_80 = arith.constant 0 : index
      %170 = vector.load %arg2[%c0_78, %c0_79, %c0_80] : memref<1x17x32xf32, #tpu.memory_space<vmem>>, vector<1x17x32xf32>
      %171 = vector.shape_cast %170 : vector<1x17x32xf32> to vector<17x32xf32>
      %c0_81 = arith.constant 0 : index
      %c0_82 = arith.constant 0 : index
      %c0_83 = arith.constant 0 : index
      %172 = vector.load %arg17[%c0_81, %c0_82, %c0_83] : memref<1x17x32xf32, #tpu.memory_space<vmem>>, vector<1x17x32xf32>
      %173 = vector.shape_cast %172 : vector<1x17x32xf32> to vector<17x32xf32>
      %174 = vector.shape_cast %171 : vector<17x32xf32> to vector<1x17x32xf32>
      tpu.vector_store %arg17[%c0_81, %c0_82, %c0_83], %174 {strides = array<i32>} : memref<1x17x32xf32, #tpu.memory_space<vmem>>, vector<1x17x32xf32>,
    } else {
    }
    %c0 = arith.constant 0 : index
    %c0_1 = arith.constant 0 : index
    %c0_2 = arith.constant 0 : index
    %3 = vector.load %arg17[%c0, %c0_1, %c0_2] : memref<1x17x32xf32, #tpu.memory_space<vmem>>, vector<1x17x32xf32>
    %4 = vector.shape_cast %3 : vector<1x17x32xf32> to vector<17x32xf32>
    %c0_3 = arith.constant 0 : index
    %c0_4 = arith.constant 0 : index
    %c0_5 = arith.constant 0 : index
    %5 = vector.load %arg3[%c0_3, %c0_4, %c0_5] : memref<1x1x32xf32, #tpu.memory_space<vmem>>, vector<1x1x32xf32>
    %6 = vector.shape_cast %5 : vector<1x1x32xf32> to vector<1x32xf32>
    %c0_6 = arith.constant 0 : index
    %c0_7 = arith.constant 0 : index
    %c0_8 = arith.constant 0 : index
    %7 = vector.load %arg4[%c0_6, %c0_7, %c0_8] : memref<1x1x32xf32, #tpu.memory_space<vmem>>, vector<1x1x32xf32>
    %8 = vector.shape_cast %7 : vector<1x1x32xf32> to vector<1x32xf32>
    %cst = arith.constant dense<0.000000e+00> : vector<17xf32>
    %9 = vector.multi_reduction <add>, %4, %cst [1] : vector<17x32xf32> to vector<17xf32>
    %10 = vector.shape_cast %9 : vector<17xf32> to vector<17x1xf32>
    %cst_9 = arith.constant 3.200000e+01 : f32
    %11 = vector.broadcast %cst_9 : f32 to vector<17x1xf32>
    %12 = arith.divf %10, %11 : vector<17x1xf32>
    %13 = vector.broadcast %12 : vector<17x1xf32> to vector<17x32xf32>
    %14 = arith.subf %4, %13 : vector<17x32xf32>
    %15 = arith.mulf %14, %14 : vector<17x32xf32>
    %cst_10 = arith.constant dense<0.000000e+00> : vector<17xf32>
    %16 = vector.multi_reduction <add>, %15, %cst_10 [1] : vector<17x32xf32> to vector<17xf32>
    %17 = vector.shape_cast %16 : vector<17xf32> to vector<17x1xf32>
    %cst_11 = arith.constant 3.200000e+01 : f32
    %18 = vector.broadcast %cst_11 : f32 to vector<17x1xf32>
    %19 = arith.divf %17, %18 : vector<17x1xf32>
    %20 = vector.broadcast %12 : vector<17x1xf32> to vector<17x32xf32>
    %21 = arith.subf %4, %20 : vector<17x32xf32>
    %cst_12 = arith.constant 9.99999996E-13 : f32
    %22 = vector.broadcast %cst_12 : f32 to vector<17x1xf32>
    %23 = arith.addf %19, %22 : vector<17x1xf32>
    %24 = math.rsqrt %23 : vector<17x1xf32>
    %25 = vector.broadcast %24 : vector<17x1xf32> to vector<17x32xf32>
    %26 = arith.mulf %21, %25 : vector<17x32xf32>
    %27 = vector.broadcast %6 : vector<1x32xf32> to vector<17x32xf32>
    %28 = arith.mulf %26, %27 : vector<17x32xf32>
    %29 = vector.broadcast %8 : vector<1x32xf32> to vector<17x32xf32>
    %30 = arith.addf %28, %29 : vector<17x32xf32>
    %c0_13 = arith.constant 0 : index
    %c0_14 = arith.constant 0 : index
    %c0_15 = arith.constant 0 : index
    %31 = vector.load %arg5[%c0_13, %c0_14, %c0_15] : memref<1x32x96xf32, #tpu.memory_space<vmem>>, vector<1x32x96xf32>
    %32 = vector.shape_cast %31 : vector<1x32x96xf32> to vector<32x96xf32>
    %cst_16 = arith.constant dense<0.000000e+00> : vector<17x96xf32>
    %33 = tpu.matmul %30, %32, %cst_16 {dimension_numbers = #tpu.dot_dimension_numbers<[1], [0], [0], [1], [0, 0, 1, 1], [], []>} : vector<17x32xf32>, vector<32x96xf32>, vector<17x96xf32> -> vector<17x96xf32>
    %c0_17 = arith.constant 0 : index
    %c0_18 = arith.constant 0 : index
    %c0_19 = arith.constant 0 : index
    %34 = vector.load %arg6[%c0_17, %c0_18, %c0_19] : memref<1x1x96xf32, #tpu.memory_space<vmem>>, vector<1x1x96xf32>
    %35 = vector.shape_cast %34 : vector<1x1x96xf32> to vector<1x96xf32>
    %36 = vector.broadcast %35 : vector<1x96xf32> to vector<17x96xf32>
    %37 = arith.addf %33, %36 : vector<17x96xf32>
    %38 = vector.extract_strided_slice %37 {offsets = [0, 0], sizes = [17, 8], strides = [1, 1]} : vector<17x96xf32> to vector<17x8xf32>
    %39 = vector.extract_strided_slice %37 {offsets = [0, 32], sizes = [17, 8], strides = [1, 1]} : vector<17x96xf32> to vector<17x8xf32>
    %40 = vector.extract_strided_slice %37 {offsets = [0, 64], sizes = [17, 8], strides = [1, 1]} : vector<17x96xf32> to vector<17x8xf32>
    %cst_20 = arith.constant dense<0.000000e+00> : vector<17x17xf32>
    %41 = tpu.matmul %38, %39, %cst_20 {dimension_numbers = #tpu.dot_dimension_numbers<[1], [1], [0], [0], [0, 0, 1, 0], [], []>} : vector<17x8xf32>, vector<17x8xf32>, vector<17x17xf32> -> vector<17x17xf32>
    %cst_21 = arith.constant 0.353553385 : f32
    %42 = vector.broadcast %cst_21 : f32 to vector<17x17xf32>
    %43 = arith.mulf %41, %42 : vector<17x17xf32>
    %cst_22 = arith.constant dense<0xFF800000> : vector<17xf32>
    %44 = vector.multi_reduction <maximumf>, %43, %cst_22 [1] : vector<17x17xf32> to vector<17xf32>
    %45 = vector.shape_cast %44 : vector<17xf32> to vector<17x1xf32>
    %46 = vector.broadcast %45 : vector<17x1xf32> to vector<17x17xf32>
    %47 = arith.subf %43, %46 : vector<17x17xf32>
    %48 = math.exp %47 : vector<17x17xf32>
    %cst_23 = arith.constant dense<0.000000e+00> : vector<17xf32>
    %49 = vector.multi_reduction <add>, %48, %cst_23 [1] : vector<17x17xf32> to vector<17xf32>
    %50 = vector.shape_cast %49 : vector<17xf32> to vector<17x1xf32>
    %51 = tpu.reciprocal %50 {approx = true} : vector<17x1xf32> -> vector<17x1xf32>
    %52 = vector.broadcast %51 : vector<17x1xf32> to vector<17x17xf32>
    %53 = arith.mulf %48, %52 : vector<17x17xf32>
    %cst_24 = arith.constant dense<0.000000e+00> : vector<17x8xf32>
    %54 = tpu.matmul %53, %40, %cst_24 {dimension_numbers = #tpu.dot_dimension_numbers<[1], [0], [0], [1], [0, 0, 1, 1], [], []>} : vector<17x17xf32>, vector<17x8xf32>, vector<17x8xf32> -> vector<17x8xf32>
    %55 = vector.extract_strided_slice %37 {offsets = [0, 8], sizes = [17, 8], strides = [1, 1]} : vector<17x96xf32> to vector<17x8xf32>
    %56 = vector.extract_strided_slice %37 {offsets = [0, 40], sizes = [17, 8], strides = [1, 1]} : vector<17x96xf32> to vector<17x8xf32>
    %57 = vector.extract_strided_slice %37 {offsets = [0, 72], sizes = [17, 8], strides = [1, 1]} : vector<17x96xf32> to vector<17x8xf32>
    %cst_25 = arith.constant dense<0.000000e+00> : vector<17x17xf32>
    %58 = tpu.matmul %55, %56, %cst_25 {dimension_numbers = #tpu.dot_dimension_numbers<[1], [1], [0], [0], [0, 0, 1, 0], [], []>} : vector<17x8xf32>, vector<17x8xf32>, vector<17x17xf32> -> vector<17x17xf32>
    %cst_26 = arith.constant 0.353553385 : f32
    %59 = vector.broadcast %cst_26 : f32 to vector<17x17xf32>
    %60 = arith.mulf %58, %59 : vector<17x17xf32>
    %cst_27 = arith.constant dense<0xFF800000> : vector<17xf32>
    %61 = vector.multi_reduction <maximumf>, %60, %cst_27 [1] : vector<17x17xf32> to vector<17xf32>
    %62 = vector.shape_cast %61 : vector<17xf32> to vector<17x1xf32>
    %63 = vector.broadcast %62 : vector<17x1xf32> to vector<17x17xf32>
    %64 = arith.subf %60, %63 : vector<17x17xf32>
    %65 = math.exp %64 : vector<17x17xf32>
    %cst_28 = arith.constant dense<0.000000e+00> : vector<17xf32>
    %66 = vector.multi_reduction <add>, %65, %cst_28 [1] : vector<17x17xf32> to vector<17xf32>
    %67 = vector.shape_cast %66 : vector<17xf32> to vector<17x1xf32>
    %68 = tpu.reciprocal %67 {approx = true} : vector<17x1xf32> -> vector<17x1xf32>
    %69 = vector.broadcast %68 : vector<17x1xf32> to vector<17x17xf32>
    %70 = arith.mulf %65, %69 : vector<17x17xf32>
    %cst_29 = arith.constant dense<0.000000e+00> : vector<17x8xf32>
    %71 = tpu.matmul %70, %57, %cst_29 {dimension_numbers = #tpu.dot_dimension_numbers<[1], [0], [0], [1], [0, 0, 1, 1], [], []>} : vector<17x17xf32>, vector<17x8xf32>, vector<17x8xf32> -> vector<17x8xf32>
    %72 = vector.extract_strided_slice %37 {offsets = [0, 16], sizes = [17, 8], strides = [1, 1]} : vector<17x96xf32> to vector<17x8xf32>
    %73 = vector.extract_strided_slice %37 {offsets = [0, 48], sizes = [17, 8], strides = [1, 1]} : vector<17x96xf32> to vector<17x8xf32>
    %74 = vector.extract_strided_slice %37 {offsets = [0, 80], sizes = [17, 8], strides = [1, 1]} : vector<17x96xf32> to vector<17x8xf32>
    %cst_30 = arith.constant dense<0.000000e+00> : vector<17x17xf32>
    %75 = tpu.matmul %72, %73, %cst_30 {dimension_numbers = #tpu.dot_dimension_numbers<[1], [1], [0], [0], [0, 0, 1, 0], [], []>} : vector<17x8xf32>, vector<17x8xf32>, vector<17x17xf32> -> vector<17x17xf32>
    %cst_31 = arith.constant 0.353553385 : f32
    %76 = vector.broadcast %cst_31 : f32 to vector<17x17xf32>
    %77 = arith.mulf %75, %76 : vector<17x17xf32>
    %cst_32 = arith.constant dense<0xFF800000> : vector<17xf32>
    %78 = vector.multi_reduction <maximumf>, %77, %cst_32 [1] : vector<17x17xf32> to vector<17xf32>
    %79 = vector.shape_cast %78 : vector<17xf32> to vector<17x1xf32>
    %80 = vector.broadcast %79 : vector<17x1xf32> to vector<17x17xf32>
    %81 = arith.subf %77, %80 : vector<17x17xf32>
    %82 = math.exp %81 : vector<17x17xf32>
    %cst_33 = arith.constant dense<0.000000e+00> : vector<17xf32>
    %83 = vector.multi_reduction <add>, %82, %cst_33 [1] : vector<17x17xf32> to vector<17xf32>
    %84 = vector.shape_cast %83 : vector<17xf32> to vector<17x1xf32>
    %85 = tpu.reciprocal %84 {approx = true} : vector<17x1xf32> -> vector<17x1xf32>
    %86 = vector.broadcast %85 : vector<17x1xf32> to vector<17x17xf32>
    %87 = arith.mulf %82, %86 : vector<17x17xf32>
    %cst_34 = arith.constant dense<0.000000e+00> : vector<17x8xf32>
    %88 = tpu.matmul %87, %74, %cst_34 {dimension_numbers = #tpu.dot_dimension_numbers<[1], [0], [0], [1], [0, 0, 1, 1], [], []>} : vector<17x17xf32>, vector<17x8xf32>, vector<17x8xf32> -> vector<17x8xf32>
    %89 = vector.extract_strided_slice %37 {offsets = [0, 24], sizes = [17, 8], strides = [1, 1]} : vector<17x96xf32> to vector<17x8xf32>
    %90 = vector.extract_strided_slice %37 {offsets = [0, 56], sizes = [17, 8], strides = [1, 1]} : vector<17x96xf32> to vector<17x8xf32>
    %91 = vector.extract_strided_slice %37 {offsets = [0, 88], sizes = [17, 8], strides = [1, 1]} : vector<17x96xf32> to vector<17x8xf32>
    %cst_35 = arith.constant dense<0.000000e+00> : vector<17x17xf32>
    %92 = tpu.matmul %89, %90, %cst_35 {dimension_numbers = #tpu.dot_dimension_numbers<[1], [1], [0], [0], [0, 0, 1, 0], [], []>} : vector<17x8xf32>, vector<17x8xf32>, vector<17x17xf32> -> vector<17x17xf32>
    %cst_36 = arith.constant 0.353553385 : f32
    %93 = vector.broadcast %cst_36 : f32 to vector<17x17xf32>
    %94 = arith.mulf %92, %93 : vector<17x17xf32>
    %cst_37 = arith.constant dense<0xFF800000> : vector<17xf32>
    %95 = vector.multi_reduction <maximumf>, %94, %cst_37 [1] : vector<17x17xf32> to vector<17xf32>
    %96 = vector.shape_cast %95 : vector<17xf32> to vector<17x1xf32>
    %97 = vector.broadcast %96 : vector<17x1xf32> to vector<17x17xf32>
    %98 = arith.subf %94, %97 : vector<17x17xf32>
    %99 = math.exp %98 : vector<17x17xf32>
    %cst_38 = arith.constant dense<0.000000e+00> : vector<17xf32>
    %100 = vector.multi_reduction <add>, %99, %cst_38 [1] : vector<17x17xf32> to vector<17xf32>
    %101 = vector.shape_cast %100 : vector<17xf32> to vector<17x1xf32>
    %102 = tpu.reciprocal %101 {approx = true} : vector<17x1xf32> -> vector<17x1xf32>
    %103 = vector.broadcast %102 : vector<17x1xf32> to vector<17x17xf32>
    %104 = arith.mulf %99, %103 : vector<17x17xf32>
    %cst_39 = arith.constant dense<0.000000e+00> : vector<17x8xf32>
    %105 = tpu.matmul %104, %91, %cst_39 {dimension_numbers = #tpu.dot_dimension_numbers<[1], [0], [0], [1], [0, 0, 1, 1], [], []>} : vector<17x17xf32>, vector<17x8xf32>, vector<17x8xf32> -> vector<17x8xf32>
    %106 = tpu.concatenate %54, %71, %88, %105 in 1 : vector<17x8xf32>, vector<17x8xf32>, vector<17x8xf32>, vector<17x8xf32> -> vector<17x32xf32>
    %c0_40 = arith.constant 0 : index
    %c0_41 = arith.constant 0 : index
    %c0_42 = arith.constant 0 : index
    %107 = vector.load %arg7[%c0_40, %c0_41, %c0_42] : memref<1x32x32xf32, #tpu.memory_space<vmem>>, vector<1x32x32xf32>
    %108 = vector.shape_cast %107 : vector<1x32x32xf32> to vector<32x32xf32>
    %cst_43 = arith.constant dense<0.000000e+00> : vector<17x32xf32>
    %109 = tpu.matmul %106, %108, %cst_43 {dimension_numbers = #tpu.dot_dimension_numbers<[1], [0], [0], [1], [0, 0, 1, 1], [], []>} : vector<17x32xf32>, vector<32x32xf32>, vector<17x32xf32> -> vector<17x32xf32>
    %c0_44 = arith.constant 0 : index
    %c0_45 = arith.constant 0 : index
    %c0_46 = arith.constant 0 : index
    %110 = vector.load %arg8[%c0_44, %c0_45, %c0_46] : memref<1x1x32xf32, #tpu.memory_space<vmem>>, vector<1x1x32xf32>
    %111 = vector.shape_cast %110 : vector<1x1x32xf32> to vector<1x32xf32>
    %112 = vector.broadcast %111 : vector<1x32xf32> to vector<17x32xf32>
    %113 = arith.addf %109, %112 : vector<17x32xf32>
    %114 = arith.addf %4, %113 : vector<17x32xf32>
    %c0_47 = arith.constant 0 : index
    %c0_48 = arith.constant 0 : index
    %c0_49 = arith.constant 0 : index
    %115 = vector.load %arg9[%c0_47, %c0_48, %c0_49] : memref<1x1x32xf32, #tpu.memory_space<vmem>>, vector<1x1x32xf32>
    %116 = vector.shape_cast %115 : vector<1x1x32xf32> to vector<1x32xf32>
    %c0_50 = arith.constant 0 : index
    %c0_51 = arith.constant 0 : index
    %c0_52 = arith.constant 0 : index
    %117 = vector.load %arg10[%c0_50, %c0_51, %c0_52] : memref<1x1x32xf32, #tpu.memory_space<vmem>>, vector<1x1x32xf32>
    %118 = vector.shape_cast %117 : vector<1x1x32xf32> to vector<1x32xf32>
    %cst_53 = arith.constant dense<0.000000e+00> : vector<17xf32>
    %119 = vector.multi_reduction <add>, %114, %cst_53 [1] : vector<17x32xf32> to vector<17xf32>
    %120 = vector.shape_cast %119 : vector<17xf32> to vector<17x1xf32>
    %cst_54 = arith.constant 3.200000e+01 : f32
    %121 = vector.broadcast %cst_54 : f32 to vector<17x1xf32>
    %122 = arith.divf %120, %121 : vector<17x1xf32>
    %123 = vector.broadcast %122 : vector<17x1xf32> to vector<17x32xf32>
    %124 = arith.subf %114, %123 : vector<17x32xf32>
    %125 = arith.mulf %124, %124 : vector<17x32xf32>
    %cst_55 = arith.constant dense<0.000000e+00> : vector<17xf32>
    %126 = vector.multi_reduction <add>, %125, %cst_55 [1] : vector<17x32xf32> to vector<17xf32>
    %127 = vector.shape_cast %126 : vector<17xf32> to vector<17x1xf32>
    %cst_56 = arith.constant 3.200000e+01 : f32
    %128 = vector.broadcast %cst_56 : f32 to vector<17x1xf32>
    %129 = arith.divf %127, %128 : vector<17x1xf32>
    %130 = vector.broadcast %122 : vector<17x1xf32> to vector<17x32xf32>
    %131 = arith.subf %114, %130 : vector<17x32xf32>
    %cst_57 = arith.constant 9.99999996E-13 : f32
    %132 = vector.broadcast %cst_57 : f32 to vector<17x1xf32>
    %133 = arith.addf %129, %132 : vector<17x1xf32>
    %134 = math.rsqrt %133 : vector<17x1xf32>
    %135 = vector.broadcast %134 : vector<17x1xf32> to vector<17x32xf32>
    %136 = arith.mulf %131, %135 : vector<17x32xf32>
    %137 = vector.broadcast %116 : vector<1x32xf32> to vector<17x32xf32>
    %138 = arith.mulf %136, %137 : vector<17x32xf32>
    %139 = vector.broadcast %118 : vector<1x32xf32> to vector<17x32xf32>
    %140 = arith.addf %138, %139 : vector<17x32xf32>
    %c0_58 = arith.constant 0 : index
    %c0_59 = arith.constant 0 : index
    %c0_60 = arith.constant 0 : index
    %141 = vector.load %arg11[%c0_58, %c0_59, %c0_60] : memref<1x32x64xf32, #tpu.memory_space<vmem>>, vector<1x32x64xf32>
    %142 = vector.shape_cast %141 : vector<1x32x64xf32> to vector<32x64xf32>
    %cst_61 = arith.constant dense<0.000000e+00> : vector<17x64xf32>
    %143 = tpu.matmul %140, %142, %cst_61 {dimension_numbers = #tpu.dot_dimension_numbers<[1], [0], [0], [1], [0, 0, 1, 1], [], []>} : vector<17x32xf32>, vector<32x64xf32>, vector<17x64xf32> -> vector<17x64xf32>
    %c0_62 = arith.constant 0 : index
    %c0_63 = arith.constant 0 : index
    %c0_64 = arith.constant 0 : index
    %144 = vector.load %arg12[%c0_62, %c0_63, %c0_64] : memref<1x1x64xf32, #tpu.memory_space<vmem>>, vector<1x1x64xf32>
    %145 = vector.shape_cast %144 : vector<1x1x64xf32> to vector<1x64xf32>
    %146 = vector.broadcast %145 : vector<1x64xf32> to vector<17x64xf32>
    %147 = arith.addf %143, %146 : vector<17x64xf32>
    %cst_65 = arith.constant 5.000000e-01 : f32
    %148 = vector.broadcast %cst_65 : f32 to vector<17x64xf32>
    %149 = arith.mulf %148, %147 : vector<17x64xf32>
    %cst_66 = arith.constant 0.707106769 : f32
    %150 = vector.broadcast %cst_66 : f32 to vector<17x64xf32>
    %151 = arith.mulf %147, %150 : vector<17x64xf32>
    %152 = math.erf %151 : vector<17x64xf32>
    %cst_67 = arith.constant 1.000000e+00 : f32
    %153 = vector.broadcast %cst_67 : f32 to vector<17x64xf32>
    %154 = arith.addf %153, %152 : vector<17x64xf32>
    %155 = arith.mulf %149, %154 : vector<17x64xf32>
    %c0_68 = arith.constant 0 : index
    %c0_69 = arith.constant 0 : index
    %c0_70 = arith.constant 0 : index
    %156 = vector.load %arg13[%c0_68, %c0_69, %c0_70] : memref<1x64x32xf32, #tpu.memory_space<vmem>>, vector<1x64x32xf32>
    %157 = vector.shape_cast %156 : vector<1x64x32xf32> to vector<64x32xf32>
    %cst_71 = arith.constant dense<0.000000e+00> : vector<17x32xf32>
    %158 = tpu.matmul %155, %157, %cst_71 {dimension_numbers = #tpu.dot_dimension_numbers<[1], [0], [0], [1], [0, 0, 1, 1], [], []>} : vector<17x64xf32>, vector<64x32xf32>, vector<17x32xf32> -> vector<17x32xf32>
    %c0_72 = arith.constant 0 : index
    %c0_73 = arith.constant 0 : index
    %c0_74 = arith.constant 0 : index
    %159 = vector.load %arg14[%c0_72, %c0_73, %c0_74] : memref<1x1x32xf32, #tpu.memory_space<vmem>>, vector<1x1x32xf32>
    %160 = vector.shape_cast %159 : vector<1x1x32xf32> to vector<1x32xf32>
    %161 = vector.broadcast %160 : vector<1x32xf32> to vector<17x32xf32>
    %162 = arith.addf %158, %161 : vector<17x32xf32>
    %163 = arith.addf %114, %162 : vector<17x32xf32>
    %c1_i32 = arith.constant 1 : i32
    %164 = arith.cmpi slt, %arg1, %c1_i32 : i32
    %165 = arith.extui %164 : i1 to i32
    %c0_i32_75 = arith.constant 0 : i32
    %166 = arith.cmpi ne, %165, %c0_i32_75 : i32
    scf.if %166 {
      %c0_78 = arith.constant 0 : index
      %c0_79 = arith.constant 0 : index
      %c0_80 = arith.constant 0 : index
      %170 = vector.load %arg17[%c0_78, %c0_79, %c0_80] : memref<1x17x32xf32, #tpu.memory_space<vmem>>, vector<1x17x32xf32>
      %171 = vector.shape_cast %170 : vector<1x17x32xf32> to vector<17x32xf32>
      %172 = vector.shape_cast %163 : vector<17x32xf32> to vector<1x17x32xf32>
      tpu.vector_store %arg17[%c0_78, %c0_79, %c0_80], %172 {strides = array<i32>} : memref<1x17x32xf32, #tpu.memory_space<vmem>>, vector<1x17x32xf32>,
    } else {
    }
    %c1_i32_76 = arith.constant 1 : i32
    %167 = arith.cmpi eq, %arg1, %c1_i32_76 : i32
    %168 = arith.extui %167 : i1 to i32
    %c0_i32_77 = arith.constant 0 : i32
    %169 = arith.cmpi ne, %168, %c0_i32_77 : i32
    scf.if %169 {
      %c0_78 = arith.constant 0 : index
      %c0_79 = arith.constant 0 : index
      %170 = vector.load %arg15[%c0_78, %c0_79] : memref<1x32xf32, #tpu.memory_space<vmem>>, vector<1x32xf32>
      %c0_80 = arith.constant 0 : index
      %c0_81 = arith.constant 0 : index
      %171 = vector.load %arg16[%c0_80, %c0_81] : memref<1x32xf32, #tpu.memory_space<vmem>>, vector<1x32xf32>
      %cst_82 = arith.constant dense<0.000000e+00> : vector<17xf32>
      %172 = vector.multi_reduction <add>, %163, %cst_82 [1] : vector<17x32xf32> to vector<17xf32>
      %173 = vector.shape_cast %172 : vector<17xf32> to vector<17x1xf32>
      %cst_83 = arith.constant 3.200000e+01 : f32
      %174 = vector.broadcast %cst_83 : f32 to vector<17x1xf32>
      %175 = arith.divf %173, %174 : vector<17x1xf32>
      %176 = vector.broadcast %175 : vector<17x1xf32> to vector<17x32xf32>
      %177 = arith.subf %163, %176 : vector<17x32xf32>
      %178 = arith.mulf %177, %177 : vector<17x32xf32>
      %cst_84 = arith.constant dense<0.000000e+00> : vector<17xf32>
      %179 = vector.multi_reduction <add>, %178, %cst_84 [1] : vector<17x32xf32> to vector<17xf32>
      %180 = vector.shape_cast %179 : vector<17xf32> to vector<17x1xf32>
      %cst_85 = arith.constant 3.200000e+01 : f32
      %181 = vector.broadcast %cst_85 : f32 to vector<17x1xf32>
      %182 = arith.divf %180, %181 : vector<17x1xf32>
      %183 = vector.broadcast %175 : vector<17x1xf32> to vector<17x32xf32>
      %184 = arith.subf %163, %183 : vector<17x32xf32>
      %cst_86 = arith.constant 9.99999996E-13 : f32
      %185 = vector.broadcast %cst_86 : f32 to vector<17x1xf32>
      %186 = arith.addf %182, %185 : vector<17x1xf32>
      %187 = math.rsqrt %186 : vector<17x1xf32>
      %188 = vector.broadcast %187 : vector<17x1xf32> to vector<17x32xf32>
      %189 = arith.mulf %184, %188 : vector<17x32xf32>
      %190 = vector.broadcast %170 : vector<1x32xf32> to vector<17x32xf32>
      %191 = arith.mulf %189, %190 : vector<17x32xf32>
      %192 = vector.broadcast %171 : vector<1x32xf32> to vector<17x32xf32>
      %193 = arith.addf %191, %192 : vector<17x32xf32>
      %c0_87 = arith.constant 0 : index
      %c0_88 = arith.constant 0 : index
      %c0_89 = arith.constant 0 : index
      %194 = vector.load %arg17[%c0_87, %c0_88, %c0_89] : memref<1x17x32xf32, #tpu.memory_space<vmem>>, vector<1x17x32xf32>
      %195 = vector.shape_cast %194 : vector<1x17x32xf32> to vector<17x32xf32>
      %196 = vector.shape_cast %193 : vector<17x32xf32> to vector<1x17x32xf32>
      tpu.vector_store %arg17[%c0_87, %c0_88, %c0_89], %196 {strides = array<i32>} : memref<1x17x32xf32, #tpu.memory_space<vmem>>, vector<1x17x32xf32>,
    } else {
    }
    return
  }
  func.func @transform_0(%arg0: i32, %arg1: i32) -> (i32, i32, i32) {
    %c0_i32 = arith.constant 0 : i32
    %c0_i32_0 = arith.constant 0 : i32
    %c0_i32_1 = arith.constant 0 : i32
    return %arg0, %c0_i32, %c0_i32_0 : i32, i32, i32
  }
  func.func @transform_1(%arg0: i32, %arg1: i32) -> (i32, i32, i32) {
    %c0_i32 = arith.constant 0 : i32
    %c0_i32_0 = arith.constant 0 : i32
    %c0_i32_1 = arith.constant 0 : i32
    return %arg1, %c0_i32, %c0_i32_0 : i32, i32, i32
  }
  func.func @transform_2(%arg0: i32, %arg1: i32) -> (i32, i32, i32) {
    %c0_i32 = arith.constant 0 : i32
    %c0_i32_0 = arith.constant 0 : i32
    %c0_i32_1 = arith.constant 0 : i32
    return %arg1, %c0_i32, %c0_i32_0 : i32, i32, i32
  }
  func.func @transform_3(%arg0: i32, %arg1: i32) -> (i32, i32, i32) {
    %c0_i32 = arith.constant 0 : i32
    %c0_i32_0 = arith.constant 0 : i32
    %c0_i32_1 = arith.constant 0 : i32
    return %arg1, %c0_i32, %c0_i32_0 : i32, i32, i32
  }
  func.func @transform_4(%arg0: i32, %arg1: i32) -> (i32, i32, i32) {
    %c0_i32 = arith.constant 0 : i32
    %c0_i32_0 = arith.constant 0 : i32
    %c0_i32_1 = arith.constant 0 : i32
    return %arg1, %c0_i32, %c0_i32_0 : i32, i32, i32
  }
  func.func @transform_5(%arg0: i32, %arg1: i32) -> (i32, i32, i32) {
    %c0_i32 = arith.constant 0 : i32
    %c0_i32_0 = arith.constant 0 : i32
    %c0_i32_1 = arith.constant 0 : i32
    return %arg1, %c0_i32, %c0_i32_0 : i32, i32, i32
  }
  func.func @transform_6(%arg0: i32, %arg1: i32) -> (i32, i32, i32) {
    %c0_i32 = arith.constant 0 : i32
    %c0_i32_0 = arith.constant 0 : i32
    %c0_i32_1 = arith.constant 0 : i32
    return %arg1, %c0_i32, %c0_i32_0 : i32, i32, i32
  }
  func.func @transform_7(%arg0: i32, %arg1: i32) -> (i32, i32, i32) {
    %c0_i32 = arith.constant 0 : i32
    %c0_i32_0 = arith.constant 0 : i32
    %c0_i32_1 = arith.constant 0 : i32
    return %arg1, %c0_i32, %c0_i32_0 : i32, i32, i32
  }
  func.func @transform_8(%arg0: i32, %arg1: i32) -> (i32, i32, i32) {
    %c0_i32 = arith.constant 0 : i32
    %c0_i32_0 = arith.constant 0 : i32
    %c0_i32_1 = arith.constant 0 : i32
    return %arg1, %c0_i32, %c0_i32_0 : i32, i32, i32
  }
  func.func @transform_9(%arg0: i32, %arg1: i32) -> (i32, i32, i32) {
    %c0_i32 = arith.constant 0 : i32
    %c0_i32_0 = arith.constant 0 : i32
    %c0_i32_1 = arith.constant 0 : i32
    return %arg1, %c0_i32, %c0_i32_0 : i32, i32, i32
  }
  func.func @transform_10(%arg0: i32, %arg1: i32) -> (i32, i32, i32) {
    %c0_i32 = arith.constant 0 : i32
    %c0_i32_0 = arith.constant 0 : i32
    %c0_i32_1 = arith.constant 0 : i32
    return %arg1, %c0_i32, %c0_i32_0 : i32, i32, i32
  }
  func.func @transform_11(%arg0: i32, %arg1: i32) -> (i32, i32, i32) {
    %c0_i32 = arith.constant 0 : i32
    %c0_i32_0 = arith.constant 0 : i32
    %c0_i32_1 = arith.constant 0 : i32
    return %arg1, %c0_i32, %c0_i32_0 : i32, i32, i32
  }
  func.func @transform_12(%arg0: i32, %arg1: i32) -> (i32, i32, i32) {
    %c0_i32 = arith.constant 0 : i32
    %c0_i32_0 = arith.constant 0 : i32
    %c0_i32_1 = arith.constant 0 : i32
    return %arg1, %c0_i32, %c0_i32_0 : i32, i32, i32
  }
  func.func @transform_13(%arg0: i32, %arg1: i32) -> (i32, i32) {
    %c0_i32 = arith.constant 0 : i32
    %c0_i32_0 = arith.constant 0 : i32
    %c0_i32_1 = arith.constant 0 : i32
    return %c0_i32, %c0_i32_0 : i32, i32
  }
  func.func @transform_14(%arg0: i32, %arg1: i32) -> (i32, i32) {
    %c0_i32 = arith.constant 0 : i32
    %c0_i32_0 = arith.constant 0 : i32
    %c0_i32_1 = arith.constant 0 : i32
    return %c0_i32, %c0_i32_0 : i32, i32
  }
  func.func @transform_15(%arg0: i32, %arg1: i32) -> (i32, i32, i32) {
    %c0_i32 = arith.constant 0 : i32
    %c0_i32_0 = arith.constant 0 : i32
    %c0_i32_1 = arith.constant 0 : i32
    return %arg0, %c0_i32, %c0_i32_0 : i32, i32, i32
  }
}

</mosaic_0001>

<bundles_post_ra>
// kernel: vit_backbone_forward.3
= control target key start
LH: loop header
LB: loop body
LE: loop exit
PB: predicated region body
PF: predicated region fallthrough
CT: control target
= control target key end

     0   :  { %vm30_vm0 = vcmask 130048   ;;  %vm407_vm1 = vcmask 261120   ;;  %s736_s2 = inlined_call_operand.vmem [shape: f32[32,16], index: 2, kind: input, shape index: {}, may-alias: {1,2}]   ;;  %s737_s0 = inlined_call_operand.vmem [shape: f32[6,16,16], index: 0, kind: input, shape index: {}]   ;;  %s738_s1 = inlined_call_operand.vmem [shape: f32[32,16], index: 1, kind: input, shape index: {}, may-alias: {1,2}]   ;;  %s739_s3 = inlined_call_operand.vmem [shape: f32[6,32,32], index: 3, kind: output, shape index: {}]  }
   0x1   :  { %v29_v0 = vld [vmem:[%s736_s2 + $0x18] sm:$0xff]  ;;  %v28_v1 = vld [vmem:[%s736_s2 + $0x10] sm:$0xff]  ;;  %v27_v2 = vld [vmem:[%s736_s2 + $0x8] sm:$0xff] }
   0x2   :  { %436 = vmatpush.xpose.msk.msra.mxu0 %vm30_vm0, %v29_v0  ;;  %442 = vmatpush.xpose.msk.msra.mxu1 %vm30_vm0, %v29_v0  ;;  %v26_v3 = vld [vmem:[%s736_s2] sm:$0xff]  ;;  %v16_v5 = vld [vmem:[%s737_s0 + $0x10] sm:$0xff]  ;;  %v15_v8 = vld [vmem:[%s737_s0 + $0x8] sm:$0xff] }
   0x3   :  { %448 = vmatpush.xpose.msk.msra.mxu2 %vm30_vm0, %v29_v0  ;;  %454 = vmatpush.xpose.msk.msra.mxu3 %vm30_vm0, %v29_v0  ;;  %v14_v4 = vld [vmem:[%s737_s0] sm:$0xff]  ;;  %v20_v7 = vld [vmem:[%s737_s0 + $0x30] sm:$0xff]  ;;  %v17_v9 = vld [vmem:[%s737_s0 + $0x18] sm:$0xff] }
   0x4   :  { %v18_v6 = vld [vmem:[%s737_s0 + $0x20] sm:$0xff]  ;;  %v19_v10 = vld [vmem:[%s737_s0 + $0x28] sm:$0xff]  ;;  %v21_v11 = vld [vmem:[%s737_s0 + $0x38] sm:$0xff] }
   0x5   :  { %v22_v12 = vld [vmem:[%s737_s0 + $0x40] sm:$0xff]  ;;  %v24_v13 = vld [vmem:[%s737_s0 + $0x50] sm:$0xff]  ;;  %v23_v14 = vld [vmem:[%s737_s0 + $0x48] sm:$0xff] }
   0x6   :  { %437 = vmatpush.xpose.msk.msra.mxu0 %vm30_vm0, %v28_v1  ;;  %443 = vmatpush.xpose.msk.msra.mxu1 %vm30_vm0, %v28_v1  ;;  %v25_v15 = vld [vmem:[%s737_s0 + $0x58] sm:$0xff]  ;;  %v218_v22 = vld [vmem:[%s738_s1 + $0x8] sm:$0xff]  ;;  %v217_v23 = vld [vmem:[%s738_s1] sm:$0xff] }
   0x7   :  { %449 = vmatpush.xpose.msk.msra.mxu2 %vm30_vm0, %v28_v1  ;;  %455 = vmatpush.xpose.msk.msra.mxu3 %vm30_vm0, %v28_v1  ;;  %v219_v28 = vld [vmem:[%s738_s1 + $0x10] sm:$0xff]  ;;  %v220_v31 = vld [vmem:[%s738_s1 + $0x18] sm:$0xff] }
   0xa   :  { %438 = vmatpush.xpose.msk.msra.mxu0 %vm30_vm0, %v27_v2  ;;  %444 = vmatpush.xpose.msk.msra.mxu1 %vm30_vm0, %v27_v2 }
   0xb   :  { %450 = vmatpush.xpose.msk.msra.mxu2 %vm30_vm0, %v27_v2  ;;  %456 = vmatpush.xpose.msk.msra.mxu3 %vm30_vm0, %v27_v2 }
   0xe   :  { %439 = vmatpush.xpose.msk.msra.mxu0 %vm30_vm0, %v26_v3  ;;  %445 = vmatpush.xpose.msk.msra.mxu1 %vm30_vm0, %v26_v3 }
   0xf   :  { %451 = vmatpush.xpose.msk.msra.mxu2 %vm30_vm0, %v26_v3  ;;  %457 = vmatpush.xpose.msk.msra.mxu3 %vm30_vm0, %v26_v3 }
  0x11   :  { %440 = vmatmul.msk.f32.vlgmr.msra.gmra.mxu0 %vm30_vm0, %v14_v4  ;;  %446 = vmatmul.msk.f32.vlgmr.msra.gmra.mxu1 %vm30_vm0, %v16_v5 }
  0x12   :  { %460 = vmatpush.xpose.msk.msrb.mxu0 %vm30_vm0, %v29_v0  ;;  %466 = vmatpush.xpose.msk.msrb.mxu1 %vm30_vm0, %v29_v0 }
  0x13   :  { %452 = vmatmul.msk.f32.vlgmr.msra.gmra.mxu2 %vm30_vm0, %v18_v6  ;;  %458 = vmatmul.msk.f32.vlgmr.msra.gmra.mxu3 %vm30_vm0, %v20_v7 }
  0x16   :  { %461 = vmatpush.xpose.msk.msrb.mxu0 %vm30_vm0, %v28_v1  ;;  %467 = vmatpush.xpose.msk.msrb.mxu1 %vm30_vm0, %v28_v1 }
  0x19   :  { %441 = vmatmul.msk.f32.gmra.mxu0 %vm30_vm0, %v15_v8  ;;  %447 = vmatmul.msk.f32.gmra.mxu1 %vm30_vm0, %v17_v9 }
  0x1a   :  { %462 = vmatpush.xpose.msk.msrb.mxu0 %vm30_vm0, %v27_v2  ;;  %468 = vmatpush.xpose.msk.msrb.mxu1 %vm30_vm0, %v27_v2 }
  0x1b   :  { %453 = vmatmul.msk.f32.gmra.mxu2 %vm30_vm0, %v19_v10  ;;  %459 = vmatmul.msk.f32.gmra.mxu3 %vm30_vm0, %v21_v11 }
  0x1e   :  { %463 = vmatpush.xpose.msk.msrb.mxu0 %vm30_vm0, %v26_v3  ;;  %469 = vmatpush.xpose.msk.msrb.mxu1 %vm30_vm0, %v26_v3 }
  0x21   :  { %464 = vmatmul.msk.f32.vlgmr.msrb.gmra.mxu0 %vm30_vm0, %v22_v12  ;;  %470 = vmatmul.msk.f32.vlgmr.msrb.gmra.mxu1 %vm30_vm0, %v24_v13 }
  0x29   :  { %465 = vmatmul.msk.f32.gmra.mxu0 %vm30_vm0, %v23_v14  ;;  %471 = vmatmul.msk.f32.gmra.mxu1 %vm30_vm0, %v25_v15 }
  0x8e   :  { %v66_v16 = vpop.f32.mrf.mxu0  ;;  %v95_v17 = vpop.f32.mrf.mxu1 }
  0x96   :  { %v69_v18 = vpop.f32.mrf.mxu0  ;;  %v98_v19 = vpop.f32.mrf.mxu1 }
  0x97   :  { %247 = vmatpush.msra.mxu0 %v69_v18  ;;  %496 = vmatpush.msrb.mxu2 %v69_v18  ;;  %v124_v20 = vpop.f32.mrf.mxu2  ;;  %v153_v21 = vpop.f32.mrf.mxu3 }
  0x98   :  { %276 = vmatpush.msra.mxu1 %v98_v19  ;;  %498 = vmatpush.msrb.mxu3 %v98_v19 }
  0x99   :  { %248 = vmatpush.msra.mxu0 %v66_v16  ;;  %497 = vmatpush.msrb.mxu2 %v66_v16 }
  0x9a   :  { %277 = vmatpush.msra.mxu1 %v95_v17  ;;  %499 = vmatpush.msrb.mxu3 %v95_v17 }
  0x9b   :  { %473 = vmatmul.msk.f32.vlgmr.msrb.gmra.mxu2 %vm30_vm0, %v218_v22  ;;  %477 = vmatmul.msk.f32.vlgmr.msrb.gmra.mxu3 %vm30_vm0, %v218_v22 }
  0x9c   :  { %472 = vmatmul.msk.f32.vlgmr.msra.gmra.mxu0 %vm30_vm0, %v217_v23  ;;  %476 = vmatmul.msk.f32.vlgmr.msra.gmra.mxu1 %vm30_vm0, %v217_v23 }
  0x9e   :  { %v182_v24 = vpop.f32.mrf.mxu0  ;;  %v211_v25 = vpop.f32.mrf.mxu1 }
  0x9f   :  { %v127_v26 = vpop.f32.mrf.mxu2  ;;  %v156_v27 = vpop.f32.mrf.mxu3 }
  0xa0   :  { %305 = vmatpush.msrb.mxu0 %v127_v26  ;;  %334 = vmatpush.msrb.mxu1 %v156_v27 }
  0xa2   :  { %306 = vmatpush.msrb.mxu0 %v124_v20  ;;  %335 = vmatpush.msrb.mxu1 %v153_v21 }
  0xa3   :  { %474 = vmatmul.msk.f32.gmra.mxu2 %vm30_vm0, %v219_v28  ;;  %478 = vmatmul.msk.f32.gmra.mxu3 %vm30_vm0, %v219_v28 }
  0xa4   :  { %480 = vmatmul.msk.f32.vlgmr.msrb.gmra.mxu0 %vm30_vm0, %v217_v23  ;;  %484 = vmatmul.msk.f32.vlgmr.msrb.gmra.mxu1 %vm30_vm0, %v217_v23 }
  0xa6   :  { %v185_v29 = vpop.f32.mrf.mxu0  ;;  %v214_v30 = vpop.f32.mrf.mxu1 }
  0xa7   :  { %363 = vmatpush.msra.mxu2 %v185_v29  ;;  %392 = vmatpush.msra.mxu3 %v214_v30 }
  0xa9   :  { %364 = vmatpush.msra.mxu2 %v182_v24  ;;  %393 = vmatpush.msra.mxu3 %v211_v25 }
  0xab   :  { %475 = vmatmul.msk.f32.gmra.mxu2 %vm30_vm0, %v220_v31  ;;  %479 = vmatmul.msk.f32.gmra.mxu3 %vm30_vm0, %v220_v31 }
  0xac   :  { %481 = vmatmul.msk.f32.gmra.mxu0 %vm30_vm0, %v218_v22  ;;  %485 = vmatmul.msk.f32.gmra.mxu1 %vm30_vm0, %v218_v22 }
  0xb3   :  { %488 = vmatmul.msk.f32.vlgmr.msra.gmra.mxu2 %vm30_vm0, %v217_v23  ;;  %492 = vmatmul.msk.f32.vlgmr.msra.gmra.mxu3 %vm30_vm0, %v217_v23 }
  0xb4   :  { %482 = vmatmul.msk.f32.gmra.mxu0 %vm30_vm0, %v219_v28  ;;  %486 = vmatmul.msk.f32.gmra.mxu1 %vm30_vm0, %v219_v28 }
  0xbb   :  { %489 = vmatmul.msk.f32.gmra.mxu2 %vm30_vm0, %v218_v22  ;;  %493 = vmatmul.msk.f32.gmra.mxu3 %vm30_vm0, %v218_v22 }
  0xbc   :  { %483 = vmatmul.msk.f32.gmra.mxu0 %vm30_vm0, %v220_v31  ;;  %487 = vmatmul.msk.f32.gmra.mxu1 %vm30_vm0, %v220_v31 }
  0xc3   :  { %490 = vmatmul.msk.f32.gmra.mxu2 %vm30_vm0, %v219_v28  ;;  %494 = vmatmul.msk.f32.gmra.mxu3 %vm30_vm0, %v219_v28 }
  0xcb   :  { %491 = vmatmul.msk.f32.gmra.mxu2 %vm30_vm0, %v220_v31  ;;  %495 = vmatmul.msk.f32.gmra.mxu3 %vm30_vm0, %v220_v31 }
 0x119   :  { %v250_v32 = vpop.f32.mrf.mxu0  ;;  %v279_v33 = vpop.f32.mrf.mxu1 }
 0x11a   :  { %408 = vst.msk [vmem:[%s739_s3] sm:$0xff] %vm407_vm1, %v250_v32 }
 0x11b   :  { %412 = vst.msk [vmem:[%s739_s3 + $0x20] sm:$0xff] %vm407_vm1, %v279_v33 }
 0x11e   :  { %v253_v34 = vpop.f32.mrf.mxu2  ;;  %v282_v35 = vpop.f32.mrf.mxu3 }
 0x11f   :  { %409 = vst.msk [vmem:[%s739_s3 + $0x8] sm:$0xff] %vm407_vm1, %v253_v34 }
 0x120   :  { %413 = vst.msk [vmem:[%s739_s3 + $0x28] sm:$0xff] %vm407_vm1, %v282_v35 }
 0x121   :  { %v308_v36 = vpop.f32.mrf.mxu0  ;;  %v337_v37 = vpop.f32.mrf.mxu1 }
 0x122   :  { %416 = vst.msk [vmem:[%s739_s3 + $0x40] sm:$0xff] %vm407_vm1, %v308_v36 }
 0x123   :  { %420 = vst.msk [vmem:[%s739_s3 + $0x60] sm:$0xff] %vm407_vm1, %v337_v37 }
 0x126   :  { %v256_v38 = vpop.f32.mrf.mxu2  ;;  %v285_v39 = vpop.f32.mrf.mxu3 }
 0x127   :  { %410 = vst.msk [vmem:[%s739_s3 + $0x10] sm:$0xff] %vm407_vm1, %v256_v38 }
 0x128   :  { %414 = vst.msk [vmem:[%s739_s3 + $0x30] sm:$0xff] %vm407_vm1, %v285_v39 }
 0x129   :  { %v311_v40 = vpop.f32.mrf.mxu0  ;;  %v340_v41 = vpop.f32.mrf.mxu1 }
 0x12a   :  { %417 = vst.msk [vmem:[%s739_s3 + $0x48] sm:$0xff] %vm407_vm1, %v311_v40 }
 0x12b   :  { %421 = vst.msk [vmem:[%s739_s3 + $0x68] sm:$0xff] %vm407_vm1, %v340_v41 }
 0x12e   :  { %v259_v42 = vpop.f32.mrf.mxu2  ;;  %v288_v43 = vpop.f32.mrf.mxu3 }
 0x12f   :  { %411 = vst.msk [vmem:[%s739_s3 + $0x18] sm:$0xff] %vm407_vm1, %v259_v42 }
 0x130   :  { %415 = vst.msk [vmem:[%s739_s3 + $0x38] sm:$0xff] %vm407_vm1, %v288_v43 }
 0x131   :  { %v314_v44 = vpop.f32.mrf.mxu0  ;;  %v343_v45 = vpop.f32.mrf.mxu1 }
 0x132   :  { %418 = vst.msk [vmem:[%s739_s3 + $0x50] sm:$0xff] %vm407_vm1, %v314_v44 }
 0x133   :  { %422 = vst.msk [vmem:[%s739_s3 + $0x70] sm:$0xff] %vm407_vm1, %v343_v45 }
 0x136   :  { %v366_v46 = vpop.f32.mrf.mxu2  ;;  %v395_v47 = vpop.f32.mrf.mxu3 }
 0x137   :  { %424 = vst.msk [vmem:[%s739_s3 + $0x80] sm:$0xff] %vm407_vm1, %v366_v46 }
 0x138   :  { %428 = vst.msk [vmem:[%s739_s3 + $0xa0] sm:$0xff] %vm407_vm1, %v395_v47 }
 0x139   :  { %v317_v48 = vpop.f32.mrf.mxu0  ;;  %v346_v49 = vpop.f32.mrf.mxu1 }
 0x13a   :  { %419 = vst.msk [vmem:[%s739_s3 + $0x58] sm:$0xff] %vm407_vm1, %v317_v48 }
 0x13b   :  { %423 = vst.msk [vmem:[%s739_s3 + $0x78] sm:$0xff] %vm407_vm1, %v346_v49 }
 0x13e   :  { %v369_v50 = vpop.f32.mrf.mxu2  ;;  %v398_v51 = vpop.f32.mrf.mxu3 }
 0x13f   :  { %425 = vst.msk [vmem:[%s739_s3 + $0x88] sm:$0xff] %vm407_vm1, %v369_v50 }
 0x140   :  { %429 = vst.msk [vmem:[%s739_s3 + $0xa8] sm:$0xff] %vm407_vm1, %v398_v51 }
 0x146   :  { %v372_v52 = vpop.f32.mrf.mxu2  ;;  %v401_v53 = vpop.f32.mrf.mxu3 }
 0x147   :  { %426 = vst.msk [vmem:[%s739_s3 + $0x90] sm:$0xff] %vm407_vm1, %v372_v52 }
 0x148   :  { %430 = vst.msk [vmem:[%s739_s3 + $0xb0] sm:$0xff] %vm407_vm1, %v401_v53 }
 0x14e   :  { %v375_v54 = vpop.f32.mrf.mxu2  ;;  %v404_v55 = vpop.f32.mrf.mxu3 }
 0x14f   :  { %427 = vst.msk [vmem:[%s739_s3 + $0x98] sm:$0xff] %vm407_vm1, %v375_v54 }
 0x150   :  { %431 = vst.msk [vmem:[%s739_s3 + $0xb8] sm:$0xff] %vm407_vm1, %v404_v55 }

// kernel: vit_backbone_forward.4
= control target key start
LH: loop header
LB: loop body
LE: loop exit
PB: predicated region body
PF: predicated region fallthrough
CT: control target
= control target key end

     0   :  { %s464_s18 = smov 0   ;;  %s582_s0 = inlined_call_operand.vmem [shape: f32[2,16,192], index: 0, kind: input, shape index: {}]   ;;  %s583_s1 = inlined_call_operand.vmem [shape: f32[192,32], index: 1, kind: input, shape index: {}]   ;;  %s584_s2 = inlined_call_operand.vmem [shape: f32[1,32], index: 2, kind: input, shape index: {}]   ;;  %s585_s3 = inlined_call_operand.vmem [shape: f32[1,1,32], index: 3, kind: input, shape index: {}]   ;;  %s586_s4 = inlined_call_operand.vmem [shape: f32[1,17,32], index: 4, kind: input, shape index: {}]   ;;  %s587_s5 = inlined_call_operand.vmem [shape: f32[2,17,32], index: 5, kind: output, shape index: {}]  }
   0x1 LB: > { %s387_s19 = sadd.s32 4294967295, %s432_s18   ;;  %p391_p0 = scmp.ge.s32.totalorder %s432_s18, 1  ;;  %s432_s18 = sphi %s464_s18, %s15_s18  }
   0x2   : > { %p187_p1 = scmp.lt.s32.totalorder %s432_s18, 3 }
   0x4   : > { %p188_p2 = pnand %p391_p0, %p187_p1 }
   0x5   : > { %p215_p3 = scmp.lt.s32.totalorder (!%p188_p2), %s387_s19, 1 }
   0x6   : > { %191 = sbr.rel (%p188_p2) target bundleno = 185 (0xb9), region = 40 }
   0xb   : > { %v244_v0 = vld [vmem:[%s583_s1 + $0x78] sm:$0xff]  ;;  %v243_v1 = vld [vmem:[%s583_s1 + $0x70] sm:$0xff]  ;;  %v242_v2 = vld [vmem:[%s583_s1 + $0x68] sm:$0xff]  ;;  %s589_s19 = smov (!%p215_p3, %s387_s19), 1  ;;  %vm257_vm0 = vcmask 523264   ;;  %vm313_vm1 = vcmask 1040384  }
   0xc   : > { %264 = vmatpush.msra.mxu0 %v244_v0  ;;  %400 = vmatpush.msra.mxu2 %v244_v0  ;;  %v252_v3 = vld [vmem:[%s583_s1 + $0xb8] sm:$0xff]  ;;  %v251_v4 = vld [vmem:[%s583_s1 + $0xb0] sm:$0xff]  ;;  %v241_v5 = vld [vmem:[%s583_s1 + $0x60] sm:$0xff]  ;;  %s399_s23 = sshll.u32 %s589_s19, 5  ;;  %s416_s28 = smul.u32 24, %s589_s19  ;;  %vm327_vm2 = vcmask 261120  }
   0xd   : > { %295 = vmatpush.msra.mxu1 %v252_v3  ;;  %v250_v6 = vld [vmem:[%s583_s1 + $0xa8] sm:$0xff]  ;;  %v240_v7 = vld [vmem:[%s583_s1 + $0x58] sm:$0xff]  ;;  %v249_v8 = vld [vmem:[%s583_s1 + $0xa0] sm:$0xff]  ;;  %s526_s7 = scalar_lea.vmem %s582_s0, %s399_s23  ;;  %vm330_vm3 = vcmask 253952  }
   0xe   : > { %265 = vmatpush.msra.mxu0 %v243_v1  ;;  %401 = vmatpush.msra.mxu2 %v243_v1  ;;  %v239_v9 = vld [vmem:[%s583_s1 + $0x50] sm:$0xff]  ;;  %v248_v10 = vld [vmem:[%s583_s1 + $0x98] sm:$0xff]  ;;  %v238_v11 = vld [vmem:[%s583_s1 + $0x48] sm:$0xff]  ;;  %s224_s10 = scalar_lea.vmem %s587_s5, %s416_s28 }
   0xf   : > { %296 = vmatpush.msra.mxu1 %v251_v4  ;;  %v247_v12 = vld [vmem:[%s583_s1 + $0x90] sm:$0xff]  ;;  %v237_v13 = vld [vmem:[%s583_s1 + $0x40] sm:$0xff]  ;;  %v246_v14 = vld [vmem:[%s583_s1 + $0x88] sm:$0xff] }
  0x10   : > { %266 = vmatpush.msra.mxu0 %v242_v2  ;;  %402 = vmatpush.msra.mxu2 %v242_v2  ;;  %v236_v15 = vld [vmem:[%s583_s1 + $0x38] sm:$0xff]  ;;  %v245_v16 = vld [vmem:[%s583_s1 + $0x80] sm:$0xff]  ;;  %v235_v17 = vld [vmem:[%s583_s1 + $0x30] sm:$0xff] }
  0x11   : > { %297 = vmatpush.msra.mxu1 %v250_v6  ;;  %v226_v18 = vld [vmem:[%s526_s7 + $0x8] sm:$0xff]  ;;  %v233_v20 = vld [vmem:[%s583_s1 + $0x20] sm:$0xff]  ;;  %v232_v21 = vld [vmem:[%s583_s1 + $0x18] sm:$0xff] }
  0x12   : > { %267 = vmatpush.msra.mxu0 %v241_v5  ;;  %403 = vmatpush.msra.mxu2 %v241_v5  ;;  %v234_v19 = vld [vmem:[%s583_s1 + $0x28] sm:$0xff]  ;;  %v231_v22 = vld [vmem:[%s583_s1 + $0x10] sm:$0xff]  ;;  %v228_v23 = vld [vmem:[%s526_s7 + $0x18] sm:$0xff] }
  0x13   : > { %298 = vmatpush.msra.mxu1 %v249_v8  ;;  %v230_v24 = vld [vmem:[%s583_s1 + $0x8] sm:$0xff]  ;;  %v229_v25 = vld [vmem:[%s583_s1] sm:$0xff]  ;;  %v227_v27 = vld [vmem:[%s526_s7 + $0x10] sm:$0xff] }
  0x14   : > { %268 = vmatpush.msra.mxu0 %v240_v7  ;;  %404 = vmatpush.msra.mxu2 %v240_v7  ;;  %v225_v26 = vld [vmem:[%s526_s7] sm:$0xff]  ;;  %v323_v42 = vld [vmem:[%s586_s4 + $0x10] sm:$0x1]  ;;  %v322_v44 = vld [vmem:[%s586_s4 + $0x8] sm:$0xff] }
  0x15   : > { %299 = vmatpush.msra.mxu1 %v248_v10  ;;  %v425_v29 = vld [vmem:[%s584_s2] ss:$0 sm:$0xff] }
  0x16   : > { %269 = vmatpush.msra.mxu0 %v239_v9  ;;  %405 = vmatpush.msra.mxu2 %v239_v9  ;;  %v310_v33 = vld [vmem:[%s585_s3] sm:$0x1] }
  0x17   : > { %300 = vmatpush.msra.mxu1 %v247_v12  ;;  %v321_v35 = vld [vmem:[%s586_s4] sm:$0xff] }
  0x18   : > { %270 = vmatpush.msra.mxu0 %v238_v11  ;;  %406 = vmatpush.msra.mxu2 %v238_v11 }
  0x19   : > { %301 = vmatpush.msra.mxu1 %v246_v14 }
  0x1a   : > { %271 = vmatpush.msra.mxu0 %v237_v13  ;;  %407 = vmatpush.msra.mxu2 %v237_v13 }
  0x1b   : > { %302 = vmatpush.msra.mxu1 %v245_v16 }
  0x1c   : > { %272 = vmatpush.msra.mxu0 %v236_v15  ;;  %408 = vmatpush.msra.mxu2 %v236_v15 }
  0x1d   : > { %395 = vmatmul.msk.f32.vlgmr.msra.gmra.mxu1 %vm257_vm0, %v226_v18 }
  0x1e   : > { %273 = vmatpush.msra.mxu0 %v235_v17  ;;  %409 = vmatpush.msra.mxu2 %v235_v17 }
  0x20   : > { %274 = vmatpush.msra.mxu0 %v234_v19  ;;  %410 = vmatpush.msra.mxu2 %v234_v19 }
  0x22   : > { %275 = vmatpush.msra.mxu0 %v233_v20  ;;  %411 = vmatpush.msra.mxu2 %v233_v20 }
  0x24   : > { %276 = vmatpush.msra.mxu0 %v232_v21  ;;  %412 = vmatpush.msra.mxu2 %v232_v21 }
  0x25   : > { %396 = vmatmul.msk.f32.gmra.mxu1 %vm257_vm0, %v228_v23 }
  0x26   : > { %277 = vmatpush.msra.mxu0 %v231_v22  ;;  %413 = vmatpush.msra.mxu2 %v231_v22 }
  0x28   : > { %278 = vmatpush.msra.mxu0 %v230_v24  ;;  %414 = vmatpush.msra.mxu2 %v230_v24 }
  0x2a   : > { %279 = vmatpush.msra.mxu0 %v229_v25  ;;  %415 = vmatpush.msra.mxu2 %v229_v25 }
  0x2b   : > { %280 = vmatmul.f32.vlgmr.msra.gmra.mxu0 %v225_v26  ;;  %283 = vmatmul.f32.vlgmr.msra.gmra.mxu2 %v227_v27 }
  0x9a   : > { %v304_v28 = vpop.f32.mrf.mxu1 }
  0xa2   : > { %v307_v37 = vpop.f32.mrf.mxu1 }
  0xa8   : > { %v281_v30 = vpop.f32.mrf.mxu0 }
  0xa9   : > { %v282_v31 = vadd.f32 %v425_v29, %v281_v30 }
  0xab   : > { %v305_v32 = vadd.f32 %v304_v28, %v282_v31 }
  0xad   : > { %v314_v34 = vrot.slane %v305_v32, 7 }
  0xae   : > { %v284_v36 = vpop.f32.mrf.mxu2 }
  0xaf   : > { %v320_v38 = vsel %vm313_vm1, %v310_v33, %v314_v34  ;;  %v285_v39 = vadd.f32 %v425_v29, %v284_v36 }
  0xb0   : > { %v324_v40 = vadd.f32 %v321_v35, %v320_v38 }
  0xb1   : > { %v308_v41 = vadd.f32 %v307_v37, %v285_v39 }
  0xb2   : > { %328 = vst.msk [vmem:[%s224_s10] sm:$0xff] %vm327_vm2, %v324_v40 }
  0xb3   : > { %v315_v43 = vrot.slane %v308_v41, 7 }
  0xb5   : > { %v316_v45 = vsel %vm313_vm1, %v314_v34, %v315_v43  ;;  %v326_v46 = vadd.f32 %v323_v42, %v315_v43 }
  0xb6   : > { %v325_v47 = vadd.f32 %v322_v44, %v316_v45 }
  0xb7   : > { %331 = vst.msk [vmem:[%s224_s10 + $0x10] sm:$0x1] %vm330_vm3, %v326_v46 }
  0xb8   : > { %329 = vst.msk [vmem:[%s224_s10 + $0x8] sm:$0xff] %vm327_vm2, %v325_v47 }
  0xb9 PF: > { %s15_s18 = sadd.s32 1, %s432_s18  }
  0xba   : > { %p12_p4 = scmp.ge.s32.totalorder %s15_s18, 4  }
  0xbc   :  { %14 = sbr.rel (!%p12_p4) target bundleno = 1 (0x1), region = 70 }

// kernel: vit_backbone_forward.5
= control target key start
LH: loop header
LB: loop body
LE: loop exit
PB: predicated region body
PF: predicated region fallthrough
CT: control target
= control target key end

     0   :  { %s2424_s18 = smov 0   ;;  %s2426_s19 = smov 0   ;;  %s2944_s0 = inlined_call_operand.vmem [shape: f32[2,17,32], index: 0, kind: input, shape index: {}]   ;;  %s2945_s1 = inlined_call_operand.vmem [shape: f32[2,1,32], index: 1, kind: input, shape index: {}]   ;;  %s2946_s2 = inlined_call_operand.vmem [shape: f32[2,1,32], index: 2, kind: input, shape index: {}]   ;;  %s2947_s3 = inlined_call_operand.vmem [shape: f32[2,32,96], index: 3, kind: input, shape index: {}]   ;;  %s2948_s4 = inlined_call_operand.vmem [shape: f32[2,1,96], index: 4, kind: input, shape index: {}]   ;;  %s2949_s5 = inlined_call_operand.vmem [shape: f32[2,32,32], index: 5, kind: input, shape index: {}]   ;;  %s2950_s6 = inlined_call_operand.vmem [shape: f32[2,1,32], index: 6, kind: input, shape index: {}]   ;;  %s2951_s7 = inlined_call_operand.vmem [shape: f32[2,1,32], index: 7, kind: input, shape index: {}]   ;;  %s2952_s8 = inlined_call_operand.vmem [shape: f32[2,1,32], index: 8, kind: input, shape index: {}]   ;;  %s2953_s9 = inlined_call_operand.vmem [shape: f32[2,32,64], index: 9, kind: input, shape index: {}]   ;;  %s2954_s10 = inlined_call_operand.vmem [shape: f32[2,1,64], index: 10, kind: input, shape index: {}]   ;;  %s2955_s11 = inlined_call_operand.vmem [shape: f32[2,64,32], index: 11, kind: input, shape index: {}]   ;;  %s2956_s12 = inlined_call_operand.vmem [shape: f32[2,1,32], index: 12, kind: input, shape index: {}]   ;;  %s2957_s13 = inlined_call_operand.vmem [shape: f32[1,32], index: 13, kind: input, shape index: {}]   ;;  %s2958_s14 = inlined_call_operand.vmem [shape: f32[1,32], index: 14, kind: input, shape index: {}]   ;;  %s2959_s15 = inlined_call_operand.vmem [shape: f32[2,17,32], index: 15, kind: output, shape index: {}]  }
   0x1   :  { %2964 = sst [smem:[#allocation8_spill]] %s2944_s0  ;;  %s2428_s20 = smov 0  }
   0x2   :  { %2965 = sst [smem:[#allocation9_spill]] %s2946_s2  ;;  %s2430_s21 = smov 0  }
   0x3   :  { %2966 = sst [smem:[#allocation10_spill]] %s2947_s3  ;;  %s2432_s22 = smov 0  }
   0x4   :  { %2967 = sst [smem:[#allocation11_spill]] %s2949_s5 }
   0x5   :  { %2968 = sst [smem:[#allocation12_spill]] %s2957_s13 }
   0x6   :  { %2969 = sst [smem:[#allocation13_spill]] %s2958_s14 }
   0x7   :  { %2970 = sst [smem:[#allocation14_spill]] %s2959_s15 }
   0x8 LB: > { %2971 = sst [smem:[#allocation2_spill]] %s2311_s18  ;;  %s34_s23 = sadd.s32 1, %s2319_s20  ;;  %s2327_s22 = sphi %s2432_s22, %s25_s22   ;;  %s2323_s21 = sphi %s2430_s21, %s2998_s21   ;;  %s2319_s20 = sphi %s2428_s20, %s2997_s20   ;;  %s2315_s19 = sphi %s2426_s19, %s2996_s19   ;;  %s2311_s18 = sphi %s2424_s18, %s2995_s18  }
   0x9   : > { %2972 = sst [smem:[#allocation3_spill]] %s2319_s20  ;;  %s37_s24 = sadd.s32 1, %s2323_s21 }
   0xa   : > { %2973 = sst [smem:[#allocation4_spill]] %s2323_s21  ;;  %p35_p0 = scmp.ge.s32.totalorder %s34_s23, 2 }
   0xb   : > { %2974 = sst [smem:[#allocation5_spill]] %s2327_s22  ;;  %p2054_p1 = scmp.ge.s32.totalorder %s2327_s22, 1 }
   0xc   : > { %p553_p2 = scmp.lt.s32.totalorder %s2327_s22, 5  ;;  %s3000_s23 = smov (%p35_p0, %s34_s23), 0 }
   0xd   : > { %2975 = sst [smem:[#allocation6_spill]] %s3000_s23  ;;  %s3002_s24 = smov (!%p35_p0, %s37_s24), %s2323_s21 }
   0xe   : > { %p554_p3 = pnand %p2054_p1, %p553_p2  ;;  %p39_p4 = scmp.ge.s32.totalorder %s3002_s24, 2 }
   0xf   : > { %p645_p5 = scmp.lt.s32.totalorder (!%p554_p3), %s2315_s19, 1  ;;  %p650_p6 = scmp.lt.s32.totalorder (!%p554_p3), %s2311_s18, 1 }
  0x10   : > { %s3004_s24 = smov (%p39_p4, %s3002_s24), 0  ;;  %557 = sbr.rel (%p554_p3) target bundleno = 2416 (0x970), region = 80 }
  0x11   : > { %2976 = sst [smem:[#allocation7_spill]] %s3004_s24 }
  0x12   : > { %s2978_s0 = sld [smem:[#allocation8_spill]] (!%p554_p3) }
  0x13   : > { %s2979_s3 = sld [smem:[#allocation10_spill]] (!%p554_p3) }
  0x14   : > { %s2980_s5 = sld [smem:[#allocation11_spill]] (!%p554_p3) }
  0x15   : > { %s3006_s19 = smov (!%p645_p5, %s2315_s19), 1 }
  0x16   : > { %s2458_s25 = scalar_select %p650_p6, %s2311_s18, 1 }
  0x17   : > { %s2129_s26 = smul.u32 24, %s3006_s19 }
  0x18   : > { %s2125_s20 = sshll.u32 %s2458_s25, 5  ;;  %s685_s15 = scalar_lea.vmem %s2954_s10, %s2458_s25 }
  0x19   : > { %s649_s21 = scalar_lea.vmem %s2978_s0, %s2129_s26  ;;  %s2475_s13 = scalar_lea.vmem %s2979_s3, %s2125_s20 }
  0x1a   : > { %s2484_s29 = scalar_lea.vmem %s2980_s5, %s2125_s20  ;;  %s2501_s19 = scalar_lea.vmem %s2953_s9, %s2125_s20 }
  0x1b   : > { %s2128_s5 = sshll.u32 %s2458_s25, 6  ;;  %s693_s23 = scalar_lea.vmem %s2956_s12, %s2458_s25 }
  0x1c   : > { %s2515_s0 = scalar_lea.vmem %s2955_s11, %s2128_s5  ;;  %s2981_s3 = sld [smem:[#allocation14_spill]] }
  0x1d   : > { %s2982_s20 = sld [smem:[#allocation2_spill]] }
  0x22   : > { %s2520_s2 = scalar_lea.vmem %s2981_s3, %s2129_s26 }
  0x23   : > { %p2065_p7 = scmp.ne.s32.totalorder %s2982_s20, 0 }
  0x25   : > { %702 = sbr.rel (%p2065_p7) target bundleno = 46 (0x2e), region = 84 }
  0x2a   : > { %v703_v0 = vld [vmem:[%s649_s21] sm:$0xff]  ;;  %vm706_vm0 = vcmask 261120   ;;  %v704_v1 = vld [vmem:[%s649_s21 + $0x8] sm:$0xff]  ;;  %v705_v2 = vld [vmem:[%s649_s21 + $0x10] sm:$0x1]  ;;  %vm709_vm1 = vcmask 253952  }
  0x2b   : > { %707 = vst.msk [vmem:[%s2520_s2] sm:$0xff] %vm706_vm0, %v703_v0 }
  0x2c   : > { %708 = vst.msk [vmem:[%s2520_s2 + $0x8] sm:$0xff] %vm706_vm0, %v704_v1 }
  0x2d   : > { %710 = vst.msk [vmem:[%s2520_s2 + $0x10] sm:$0x1] %vm709_vm1, %v705_v2 }
  0x2e PF: > { %vm716_vm2 = vcmask 261120   ;;  %vm723_vm3 = vcmask 253952   ;;  %v2329_v9 = vmov 32.0   ;;  %v806_v31 = vld [vmem:[%s2475_s13 + $0x18] sm:$0xff]  ;;  %v805_v32 = vld [vmem:[%s2475_s13 + $0x10] sm:$0xff]  ;;  %v804_v33 = vld [vmem:[%s2475_s13 + $0x8] sm:$0xff]  ;;  %s2986_s16 = scalar_lea.vmem %s2948_s4, %s2458_s25 }
  0x2f   : > { %2213 = vrcp.f32 %v2329_v9  ;;  %832 = vmatpush.msra.mxu0 %v806_v31  ;;  %v803_v34 = vld [vmem:[%s2475_s13] sm:$0xff]  ;;  %s2983_s13 = scalar_lea.vmem %s2945_s1, %s2458_s25  ;;  %s2984_s18 = sld [smem:[#allocation9_spill]]  ;;  %vm855_vm14 = vcmask 64512   ;;  %vm949_vm15 = vcmask 1040384   ;;  %vm897_vm0 = vcmask 138240  }
  0x30   : > { %v2205_v52 = vld [vmem:[%s2983_s13] ss:$0 sm:$0xff]  ;;  %s2330_s17 = smov 96   ;;  %s2331_s24 = smov 88   ;;  %vm904_vm1 = vcmask 131072  }
  0x31   : > { %833 = vmatpush.msra.mxu0 %v805_v32  ;;  %s2332_s14 = smov 120   ;;  %s2333_s22 = smov 72  }
  0x32   : > { %v2527_v3 = vld [vmem:[%s2520_s2] sm:$0xff]  ;;  %s2334_s20 = smov 104   ;;  %s2335_s3 = smov 80  }
  0x33   : > { %v717_v5 = vsel %vm716_vm2, %v2527_v3, 0.0  ;;  %v2537_v7 = vld [vmem:[%s2520_s2 + $0x8] sm:$0xff]  ;;  %834 = vmatpush.msra.mxu0 %v804_v33  ;;  %s2336_s5 = smov 112   ;;  %s2337_s13 = smov 64  }
  0x34   : > { %v2530_v4 = vld [vmem:[%s2520_s2 + $0x10] sm:$0x1]  ;;  %718 = vadd.xlane.f32.xlu0 %v717_v5  ;;  %v720_v8 = vsel %vm716_vm2, %v2537_v7, 0.0  ;;  %s2338_s21 = smov 40   ;;  %s2339_s26 = smov 56  }
  0x35   : > { %v724_v6 = vsel %vm723_vm3, %v2530_v4, 0.0  ;;  %v2214_v10 = vpop.eup %2213  ;;  %835 = vmatpush.msra.mxu0 %v803_v34  ;;  %s2985_s27 = scalar_lea.vmem %s2984_s18, %s2458_s25  ;;  %s2340_s18 = smov 48  }
  0x36   : > { %725 = vadd.xlane.f32.xlu1 %v724_v6  ;;  %v728_v11 = vmul.f32 32.0, %v2214_v10  ;;  %vm732_vm4 = vweird.f32 %v2214_v10  ;;  %v2206_v56 = vld [vmem:[%s2985_s27] ss:$0 sm:$0xff]  ;;  %s2341_s27 = smov 8   ;;  %s2342_s28 = smov 16  }
  0x37   : > { %s2343_s30 = smov 24  }
  0x38   : > { %v729_v12 = vsub.f32 1.0, %v728_v11 }
  0x3a   : > { %v730_v13 = vmul.f32 %v2214_v10, %v729_v12 }
  0x3c   : > { %721 = vadd.xlane.f32.xlu0 %v720_v8  ;;  %v731_v14 = vadd.f32 %v2214_v10, %v730_v13 }
  0x3e   : > { %v2541_v15 = vsel %vm732_vm4, %v2214_v10, %v731_v14  ;;  %vm1410_vm4 = vcmask 130048  }
  0xa7   : > { %v719_v16 = vpop.xlane.xlu0 %718 }
  0xa8   : > { %v734_v17 = vmul.f32 %v2541_v15, %v719_v16  ;;  %v2207_v16 = vld [vmem:[%s2986_s16] ss:$0 sm:$0xff] }
  0xa9   : > { %v726_v20 = vpop.xlane.xlu1 %725 }
  0xaa   : > { %v737_v18 = vsub.f32 %v2527_v3, %v734_v17  ;;  %v736_v24 = vmul.f32 %v2541_v15, %v726_v20 }
  0xac   : > { %v740_v19 = vmul.f32 %v737_v18, %v737_v18  ;;  %v2550_v26 = vsub.f32 %v2530_v4, %v736_v24 }
  0xae   : > { %v743_v21 = vsel %vm716_vm2, %v740_v19, 0.0  ;;  %v742_v29 = vmul.f32 %v2550_v26, %v2550_v26 }
  0xaf   : > { %744 = vadd.xlane.f32.xlu1 %v743_v21  ;;  %v722_v22 = vpop.xlane.xlu0 %721 }
  0xb0   : > { %v735_v23 = vmul.f32 %v2541_v15, %v722_v22  ;;  %v749_v30 = vsel %vm723_vm3, %v742_v29, 0.0 }
  0xb2   : > { %v738_v25 = vsub.f32 %v2537_v7, %v735_v23 }
  0xb4   : > { %v741_v27 = vmul.f32 %v738_v25, %v738_v25 }
  0xb6   : > { %v746_v28 = vsel %vm716_vm2, %v741_v27, 0.0 }
  0xb7   : > { %747 = vadd.xlane.f32.xlu2 %v746_v28 }
  0xbf   : > { %750 = vadd.xlane.f32.xlu2 %v749_v30 }
 0x122   : > { %v745_v35 = vpop.xlane.xlu1 %744 }
 0x123   : > { %v752_v36 = vmul.f32 %v745_v35, %v2541_v15 }
 0x125   : > { %v755_v37 = vadd.f32 1e-12, %v752_v36 }
 0x127   : > { %2215 = vrsqrt.f32 %v755_v37  ;;  %vm764_vm6 = vweird.f32 %v755_v37 }
 0x12a   : > { %v748_v38 = vpop.xlane.xlu2 %747 }
 0x12b   : > { %v753_v39 = vmul.f32 %v748_v38, %v2541_v15 }
 0x12d   : > { %v2216_v40 = vpop.eup %2215  ;;  %v756_v41 = vadd.f32 1e-12, %v753_v39 }
 0x12e   : > { %v759_v42 = vmul.f32 %v2216_v40, %v755_v37  ;;  %vm765_vm5 = vweird.f32 %v2216_v40 }
 0x12f   : > { %2217 = vrsqrt.f32 %v756_v41  ;;  %vm766_vm7 = vmor %vm764_vm6, %vm765_vm5  ;;  %vm774_vm9 = vweird.f32 %v756_v41  ;;  %vm1414_vm5 = vcmask 195584  }
 0x130   : > { %v760_v43 = vmul.f32 %v2216_v40, %v759_v42 }
 0x132   : > { %v761_v44 = vmul.f32 0.5, %v760_v43  ;;  %v751_v45 = vpop.xlane.xlu2 %750 }
 0x133   : > { %v754_v46 = vmul.f32 %v751_v45, %v2541_v15 }
 0x134   : > { %v762_v47 = vsub.f32 1.5, %v761_v44 }
 0x135   : > { %v2218_v48 = vpop.eup %2217  ;;  %v757_v49 = vadd.f32 1e-12, %v754_v46 }
 0x136   : > { %v763_v50 = vmul.f32 %v2216_v40, %v762_v47  ;;  %v769_v51 = vmul.f32 %v2218_v48, %v756_v41  ;;  %vm775_vm8 = vweird.f32 %v2218_v48 }
 0x137   : > { %2219 = vrsqrt.f32 %v757_v49  ;;  %vm776_vm10 = vmor %vm774_vm9, %vm775_vm8  ;;  %vm784_vm12 = vweird.f32 %v757_v49 }
 0x138   : > { %v767_v53 = vsel %vm766_vm7, %v2216_v40, %v763_v50  ;;  %v770_v54 = vmul.f32 %v2218_v48, %v769_v51 }
 0x139   : > { %v788_v55 = vmul.f32 %v767_v53, %v737_v18 }
 0x13a   : > { %v771_v57 = vmul.f32 0.5, %v770_v54 }
 0x13b   : > { %v794_v58 = vmul.f32 %v2205_v52, %v788_v55 }
 0x13c   : > { %v772_v59 = vsub.f32 1.5, %v771_v57 }
 0x13d   : > { %v2220_v60 = vpop.eup %2219  ;;  %v800_v61 = vadd.f32 %v2206_v56, %v794_v58 }
 0x13e   : > { %v773_v62 = vmul.f32 %v2218_v48, %v772_v59  ;;  %v779_v63 = vmul.f32 %v2220_v60, %v757_v49  ;;  %vm785_vm11 = vweird.f32 %v2220_v60 }
 0x13f   : > { %2066 = vmatmul.msk.f32.vlgmr.msra.gmra.mxu0 %vm716_vm2, %v800_v61  ;;  %vm786_vm13 = vmor %vm784_vm12, %vm785_vm11 }
 0x140   : > { %v777_v0 = vsel %vm776_vm10, %v2218_v48, %v773_v62  ;;  %v780_v1 = vmul.f32 %v2220_v60, %v779_v63 }
 0x141   : > { %v789_v2 = vmul.f32 %v777_v0, %v738_v25 }
 0x142   : > { %v781_v5 = vmul.f32 0.5, %v780_v1 }
 0x143   : > { %v795_v6 = vmul.f32 %v2205_v52, %v789_v2 }
 0x144   : > { %v782_v8 = vsub.f32 1.5, %v781_v5 }
 0x145   : > { %v801_v9 = vadd.f32 %v2206_v56, %v795_v6 }
 0x146   : > { %v783_v10 = vmul.f32 %v2220_v60, %v782_v8 }
 0x147   : > { %2067 = vmatmul.msk.f32.gmra.mxu0 %vm716_vm2, %v801_v9 }
 0x148   : > { %v787_v11 = vsel %vm786_vm13, %v2220_v60, %v783_v10 }
 0x149   : > { %v790_v12 = vmul.f32 %v787_v11, %v2550_v26 }
 0x14b   : > { %v796_v13 = vmul.f32 %v2205_v52, %v790_v12 }
 0x14d   : > { %v802_v14 = vadd.f32 %v2206_v56, %v796_v13 }
 0x14f   : > { %2068 = vmatmul.msk.f32.gmra.mxu0 %vm716_vm2, %v802_v14 }
 0x1bc   : > { %v837_v17 = vpop.f32.mrf.mxu0 }
 0x1bd   : > { %v2582_v18 = vadd.f32 %v2207_v16, %v837_v17 }
 0x1bf   : > { %849 = vrot.lane.b32.xlu2 %v2582_v18, %s2330_s17 }
 0x1c4   : > { %v840_v19 = vpop.f32.mrf.mxu0 }
 0x1c5   : > { %v2585_v20 = vadd.f32 %v2207_v16, %v840_v19 }
 0x1c7   : > { %986 = vrot.lane.b32.xlu2 %v2585_v20, %s2331_s24  ;;  %851 = vrot.lane.b32.xlu1 %v2585_v20, %s2330_s17  ;;  %v2663_v2 = vpack.i.bf16 %v2582_v18, %v2585_v20 }
 0x1cc   : > { %v843_v21 = vpop.f32.mrf.mxu0 }
 0x1cd   : > { %v2589_v22 = vadd.f32 %v2207_v16, %v843_v21 }
 0x1cf   : > { %980 = vrot.lane.b32.xlu2 %v2585_v20, %s2332_s14  ;;  %984 = vrot.lane.b32.xlu1 %v2582_v18, %s2331_s24 }
 0x1d0   : > { %853 = vrot.lane.b32.xlu0 %v2589_v22, %s2330_s17  ;;  %s2987_s17 = scalar_lea.vmem %s2950_s6, %s2458_s25 }
 0x1d7   : > { %1248 = vrot.lane.b32.xlu2 %v2585_v20, %s2333_s22  ;;  %1250 = vrot.lane.b32.xlu1 %v2589_v22, %s2333_s22 }
 0x1d8   : > { %988 = vrot.lane.b32.xlu0 %v2589_v22, %s2331_s24 }
 0x1df   : > { %1240 = vrot.lane.b32.xlu2 %v2582_v18, %s2334_s20  ;;  %1246 = vrot.lane.b32.xlu1 %v2582_v18, %s2333_s22 }
 0x1e0   : > { %978 = vrot.lane.b32.xlu0 %v2582_v18, %s2332_s14 }
 0x1e7   : > { %1242 = vrot.lane.b32.xlu2 %v2585_v20, %s2334_s20  ;;  %1117 = vrot.lane.b32.xlu1 %v2585_v20, %s2335_s3 }
 0x1e8   : > { %982 = vrot.lane.b32.xlu0 %v2589_v22, %s2332_s14 }
 0x1ef   : > { %1111 = vrot.lane.b32.xlu2 %v2585_v20, %s2336_s5  ;;  %1109 = vrot.lane.b32.xlu1 %v2582_v18, %s2336_s5 }
 0x1f0   : > { %1119 = vrot.lane.b32.xlu0 %v2589_v22, %s2335_s3 }
 0x1f7   : > { %936 = vrot.lane.b32.xlu2 %v2589_v22, %s2337_s13  ;;  %1113 = vrot.lane.b32.xlu1 %v2589_v22, %s2336_s5 }
 0x1f8   : > { %1115 = vrot.lane.b32.xlu0 %v2582_v18, %s2335_s3  ;;  %s2989_s3 = scalar_lea.vmem %s2952_s8, %s2458_s25 }
 0x200   : > { %1244 = vrot.lane.b32.xlu0 %v2589_v22, %s2334_s20 }
 0x219   : > { %v850_v23 = vpop.permute.xlu2 %849 }
 0x221   : > { %v987_v24 = vpop.permute.xlu2 %986 }
 0x229   : > { %v981_v25 = vpop.permute.xlu2 %980 }
 0x231   : > { %v1249_v26 = vpop.permute.xlu2 %1248 }
 0x239   : > { %v1241_v27 = vpop.permute.xlu2 %1240  ;;  %v852_v28 = vpop.permute.xlu1 %851 }
 0x241   : > { %v1243_v29 = vpop.permute.xlu2 %1242  ;;  %v985_v31 = vpop.permute.xlu1 %984 }
 0x242   : > { %v854_v30 = vpop.permute.xlu0 %853 }
 0x243   : > { %2069 = vmatpush.xpose.msk.msra.mxu1 %vm855_vm14, %v854_v30 }
 0x247   : > { %2070 = vmatpush.xpose.msk.msra.mxu1 %vm855_vm14, %v852_v28 }
 0x249   : > { %v1112_v32 = vpop.permute.xlu2 %1111  ;;  %v1251_v34 = vpop.permute.xlu1 %1250 }
 0x24a   : > { %v989_v33 = vpop.permute.xlu0 %988 }
 0x24b   : > { %2071 = vmatpush.xpose.msk.msra.mxu1 %vm855_vm14, %v850_v23  ;;  %2079 = vmatpush.xpose.msk.msra.mxu3 %vm855_vm14, %v989_v33 }
 0x24e   : > { %2072 = vmatmul.msk.f32.vlgmr.msra.gmra.mxu1 %vm855_vm14, %v2582_v18 }
 0x24f   : > { %2080 = vmatpush.xpose.msk.msra.mxu3 %vm855_vm14, %v987_v24 }
 0x251   : > { %v937_v35 = vpop.permute.xlu2 %936  ;;  %v1247_v37 = vpop.permute.xlu1 %1246 }
 0x252   : > { %v979_v36 = vpop.permute.xlu0 %978  ;;  %2075 = vmatpush.msk.msra.mxu2 %vm949_vm15, %v937_v35 }
 0x253   : > { %2081 = vmatpush.xpose.msk.msra.mxu3 %vm855_vm14, %v985_v31 }
 0x256   : > { %2073 = vmatmul.msk.f32.gmra.mxu1 %vm855_vm14, %v2585_v20  ;;  %2082 = vmatmul.msk.f32.vlgmr.msra.gmra.mxu3 %vm855_vm14, %v979_v36 }
 0x257   : > { %2099 = vmatpush.xpose.msk.msrb.mxu3 %vm855_vm14, %v1251_v34 }
 0x259   : > { %v1118_v40 = vpop.permute.xlu1 %1117 }
 0x25a   : > { %v983_v38 = vpop.permute.xlu0 %982 }
 0x25b   : > { %2100 = vmatpush.xpose.msk.msrb.mxu3 %vm855_vm14, %v1249_v26 }
 0x25e   : > { %2074 = vmatmul.msk.f32.gmra.mxu1 %vm855_vm14, %v2589_v22  ;;  %2083 = vmatmul.msk.f32.gmra.mxu3 %vm855_vm14, %v981_v25 }
 0x25f   : > { %2101 = vmatpush.xpose.msk.msrb.mxu3 %vm855_vm14, %v1247_v37 }
 0x261   : > { %v1110_v42 = vpop.permute.xlu1 %1109 }
 0x262   : > { %v1120_v39 = vpop.permute.xlu0 %1119 }
 0x263   : > { %2089 = vmatpush.xpose.msk.msrb.mxu0 %vm855_vm14, %v1120_v39 }
 0x266   : > { %2084 = vmatmul.msk.f32.gmra.mxu3 %vm855_vm14, %v983_v38 }
 0x267   : > { %2090 = vmatpush.xpose.msk.msrb.mxu0 %vm855_vm14, %v1118_v40 }
 0x269   : > { %v1114_v43 = vpop.permute.xlu1 %1113 }
 0x26a   : > { %v1116_v41 = vpop.permute.xlu0 %1115 }
 0x26b   : > { %2091 = vmatpush.xpose.msk.msrb.mxu0 %vm855_vm14, %v1116_v41 }
 0x26e   : > { %2092 = vmatmul.msk.f32.vlgmr.msrb.gmra.mxu0 %vm855_vm14, %v1110_v42  ;;  %2102 = vmatmul.msk.f32.vlgmr.msrb.gmra.mxu3 %vm855_vm14, %v1241_v27 }
 0x272   : > { %v1245_v44 = vpop.permute.xlu0 %1244 }
 0x276   : > { %2093 = vmatmul.msk.f32.gmra.mxu0 %vm855_vm14, %v1112_v32  ;;  %2103 = vmatmul.msk.f32.gmra.mxu3 %vm855_vm14, %v1243_v29 }
 0x27e   : > { %2094 = vmatmul.msk.f32.gmra.mxu0 %vm855_vm14, %v1114_v43  ;;  %2104 = vmatmul.msk.f32.gmra.mxu3 %vm855_vm14, %v1245_v44 }
 0x2cb   : > { %v885_v45 = vpop.f32.mrf.mxu1 }
 0x2cc   : > { %v894_v46 = vmul.f32 0.35355338, %v885_v45 }
 0x2ce   : > { %v898_v47 = vsel %vm897_vm0, %v894_v46, -inf }
 0x2cf   : > { %899 = vmax.xlane.f32.xlu0 %v898_v47 }
 0x2d3   : > { %v888_v48 = vpop.f32.mrf.mxu1 }
 0x2d4   : > { %v2640_v49 = vmul.f32 0.35355338, %v888_v48 }
 0x2d6   : > { %v901_v50 = vsel %vm897_vm0, %v2640_v49, -inf }
 0x2d7   : > { %902 = vmax.xlane.f32.xlu2 %v901_v50 }
 0x2d9   : > { %v1019_v51 = vpop.f32.mrf.mxu3 }
 0x2da   : > { %v1028_v52 = vmul.f32 0.35355338, %v1019_v51 }
 0x2db   : > { %v891_v60 = vpop.f32.mrf.mxu1 }
 0x2dc   : > { %v1031_v53 = vsel %vm897_vm0, %v1028_v52, -inf  ;;  %v2653_v61 = vmul.f32 0.35355338, %v891_v60 }
 0x2dd   : > { %1032 = vmax.xlane.f32.xlu0 %v1031_v53 }
 0x2de   : > { %v905_v0 = vsel %vm904_vm1, %v2653_v61, -inf }
 0x2e1   : > { %v1022_v54 = vpop.f32.mrf.mxu3 }
 0x2e2   : > { %v2645_v55 = vmul.f32 0.35355338, %v1022_v54 }
 0x2e4   : > { %v1034_v56 = vsel %vm897_vm0, %v2645_v55, -inf }
 0x2e5   : > { %1035 = vmax.xlane.f32.xlu2 %v1034_v56 }
 0x2e9   : > { %v1025_v5 = vpop.f32.mrf.mxu3 }
 0x2ea   : > { %v2679_v14 = vmul.f32 0.35355338, %v1025_v5 }
 0x2eb   : > { %v1150_v57 = vpop.f32.mrf.mxu0 }
 0x2ec   : > { %v2649_v58 = vmul.f32 0.35355338, %v1150_v57  ;;  %v1037_v17 = vsel %vm904_vm1, %v2679_v14, -inf }
 0x2ee   : > { %v1162_v59 = vsel %vm897_vm0, %v2649_v58, -inf }
 0x2ef   : > { %1163 = vmax.xlane.f32.xlu1 %v1162_v59 }
 0x2f1   : > { %v1281_v6 = vpop.f32.mrf.mxu3 }
 0x2f2   : > { %v2673_v10 = vmul.f32 0.35355338, %v1281_v6 }
 0x2f3   : > { %v1153_v62 = vpop.f32.mrf.mxu0 }
 0x2f4   : > { %v2655_v63 = vmul.f32 0.35355338, %v1153_v62  ;;  %v1293_v13 = vsel %vm897_vm0, %v2673_v10, -inf }
 0x2f6   : > { %v1165_v1 = vsel %vm897_vm0, %v2655_v63, -inf }
 0x2f7   : > { %906 = vmax.xlane.f32.xlu1 %v905_v0  ;;  %1166 = vmax.xlane.f32.xlu0 %v1165_v1 }
 0x2f9   : > { %v1284_v12 = vpop.f32.mrf.mxu3 }
 0x2fa   : > { %v2681_v16 = vmul.f32 0.35355338, %v1284_v12 }
 0x2fb   : > { %v1156_v8 = vpop.f32.mrf.mxu0 }
 0x2fc   : > { %v2671_v9 = vmul.f32 0.35355338, %v1156_v8  ;;  %v1296_v20 = vsel %vm897_vm0, %v2681_v16, -inf }
 0x2fd   : > { %2196 = vrot.lane.b32.xlu2 %v2663_v2, %s2338_s21 }
 0x2fe   : > { %v1168_v11 = vsel %vm904_vm1, %v2671_v9, -inf }
 0x301   : > { %v1287_v21 = vpop.f32.mrf.mxu3 }
 0x302   : > { %v2687_v24 = vmul.f32 0.35355338, %v1287_v21 }
 0x304   : > { %v1299_v25 = vsel %vm904_vm1, %v2687_v24, -inf }
 0x30b   : > { %1068 = vrot.lane.b32.xlu0 %v2589_v22, %s2339_s26 }
 0x310   : > { %2186 = vrot.lane.b32.xlu1 %v2663_v2, %s2337_s13 }
 0x313   : > { %2191 = vrot.lane.b32.xlu0 %v2663_v2, %s2339_s26 }
 0x33a   : > { %1169 = vmax.xlane.f32.xlu1 %v1168_v11 }
 0x33d   : > { %1294 = vmax.xlane.f32.xlu0 %v1293_v13 }
 0x342   : > { %v900_v18 = vpop.xlane.xlu0 %899  ;;  %1038 = vmax.xlane.f32.xlu1 %v1037_v17 }
 0x343   : > { %v908_v19 = vsub.f32 %v894_v46, %v900_v18 }
 0x345   : > { %v911_v23 = vmul.f32 1.442695, %v908_v19  ;;  %1297 = vmax.xlane.f32.xlu0 %v1296_v20 }
 0x347   : > { %2221 = vpow2.f32 %v911_v23 }
 0x34a   : > { %v903_v28 = vpop.xlane.xlu2 %902 }
 0x34b   : > { %v909_v31 = vsub.f32 %v2640_v49, %v903_v28 }
 0x34d   : > { %v2691_v26 = vpop.eup %2221  ;;  %1300 = vmax.xlane.f32.xlu0 %v1299_v25  ;;  %v913_v33 = vmul.f32 1.442695, %v909_v31 }
 0x34e   : > { %v917_v27 = vsel %vm897_vm0, %v2691_v26, 0.0 }
 0x34f   : > { %918 = vadd.xlane.f32.xlu2 %v917_v27 }
 0x350   : > { %v1033_v29 = vpop.xlane.xlu0 %1032 }
 0x351   : > { %v1040_v30 = vsub.f32 %v1028_v52, %v1033_v29 }
 0x353   : > { %v1043_v32 = vmul.f32 1.442695, %v1040_v30 }
 0x355   : > { %2223 = vpow2.f32 %v1043_v32 }
 0x356   : > { %2225 = vpow2.f32 %v913_v33 }
 0x358   : > { %v1036_v34 = vpop.xlane.xlu2 %1035 }
 0x359   : > { %v1041_v36 = vsub.f32 %v2645_v55, %v1036_v34 }
 0x35b   : > { %v2696_v35 = vpop.eup %2223  ;;  %1330 = vrot.lane.b32.xlu1 %v2589_v22, %s2338_s21  ;;  %v1045_v38 = vmul.f32 1.442695, %v1041_v36  ;;  %s2990_s21 = sld [smem:[#allocation2_spill]] }
 0x35c   : > { %v1049_v37 = vsel %vm897_vm0, %v2696_v35, 0.0  ;;  %v2703_v39 = vpop.eup %2225 }
 0x35d   : > { %1050 = vadd.xlane.f32.xlu0 %v1049_v37  ;;  %2227 = vpow2.f32 %v1045_v38  ;;  %v920_v42 = vsel %vm897_vm0, %v2703_v39, 0.0 }
 0x360   : > { %v2197_v12 = vpop.permute.xlu2 %2196 }
 0x361   : > { %v2198_v34 = vunpack.i.l.bf16 %v2197_v12  ;;  %v2199_v36 = vunpack.i.h.bf16 %v2197_v12  ;;  %p2121_p8 = scmp.ge.s32.totalorder %s2990_s21, 1 }
 0x362   : > { %v1164_v40 = vpop.xlane.xlu1 %1163 }
 0x363   : > { %v1171_v41 = vsub.f32 %v2649_v58, %v1164_v40  ;;  %v2708_v44 = vpop.eup %2227 }
 0x364   : > { %v1052_v47 = vsel %vm897_vm0, %v2708_v44, 0.0 }
 0x365   : > { %v1174_v43 = vmul.f32 1.442695, %v1171_v41  ;;  %921 = vadd.xlane.f32.xlu0 %v920_v42 }
 0x367   : > { %2229 = vpow2.f32 %v1174_v43 }
 0x36a   : > { %v907_v45 = vpop.xlane.xlu1 %906  ;;  %v2719_v52 = vpop.xlane.xlu0 %1166 }
 0x36b   : > { %v910_v46 = vsub.f32 %v2653_v61, %v907_v45  ;;  %v1172_v43 = vsub.f32 %v2655_v63, %v2719_v52 }
 0x36d   : > { %v2713_v48 = vpop.eup %2229  ;;  %v915_v49 = vmul.f32 1.442695, %v910_v46  ;;  %1053 = vadd.xlane.f32.xlu0 %v1052_v47  ;;  %v1176_v47 = vmul.f32 1.442695, %v1172_v43 }
 0x36e   : > { %v1180_v50 = vsel %vm897_vm0, %v2713_v48, 0.0 }
 0x36f   : > { %2231 = vpow2.f32 %v915_v49  ;;  %1181 = vadd.xlane.f32.xlu2 %v1180_v50 }
 0x375   : > { %v2717_v51 = vpop.eup %2231 }
 0x376   : > { %v923_v53 = vsel %vm904_vm1, %v2717_v51, 0.0 }
 0x377   : > { %924 = vadd.xlane.f32.xlu2 %v923_v53 }
 0x37d   : > { %v1069_v54 = vpop.permute.xlu0 %1068 }
 0x381   : > { %2201 = vrot.lane.b32.xlu0 %v2663_v2, %s2340_s18 }
 0x382   : > { %v2187_v55 = vpop.permute.xlu1 %2186 }
 0x383   : > { %v2188_v56 = vunpack.i.l.bf16 %v2187_v55  ;;  %v2189_v58 = vunpack.i.h.bf16 %v2187_v55 }
 0x385   : > { %v2192_v57 = vpop.permute.xlu0 %2191  ;;  %966 = vmatpush.msra.mxu2 %v2188_v56 }
 0x386   : > { %v2193_v59 = vunpack.i.l.bf16 %v2192_v57  ;;  %v2194_v60 = vunpack.i.h.bf16 %v2192_v57 }
 0x387   : > { %967 = vmatpush.msra.mxu2 %v2189_v58 }
 0x389   : > { %2085 = vmatpush.msk.msrb.mxu2 %vm949_vm15, %v1069_v54 }
 0x38b   : > { %1097 = vmatpush.msrb.mxu2 %v2193_v59 }
 0x38d   : > { %1098 = vmatpush.msrb.mxu2 %v2194_v60 }
 0x3ad   : > { %v1170_v61 = vpop.xlane.xlu1 %1169 }
 0x3ae   : > { %v1173_v13 = vsub.f32 %v2671_v9, %v1170_v61 }
 0x3b0   : > { %v1295_v62 = vpop.xlane.xlu0 %1294 }
 0x3b1   : > { %v1302_v0 = vsub.f32 %v2673_v10, %v1295_v62  ;;  %v1178_v10 = vmul.f32 1.442695, %v1173_v13 }
 0x3b3   : > { %v1305_v1 = vmul.f32 1.442695, %v1302_v0 }
 0x3b5   : > { %2233 = vpow2.f32 %v1305_v1  ;;  %v1039_v5 = vpop.xlane.xlu1 %1038 }
 0x3b6   : > { %v1042_v2 = vsub.f32 %v2679_v14, %v1039_v5 }
 0x3b8   : > { %v1047_v6 = vmul.f32 1.442695, %v1042_v2  ;;  %v1298_v8 = vpop.xlane.xlu0 %1297 }
 0x3b9   : > { %v1303_v11 = vsub.f32 %v2681_v16, %v1298_v8 }
 0x3ba   : > { %2235 = vpow2.f32 %v1047_v6 }
 0x3bb   : > { %v2730_v17 = vpop.eup %2233  ;;  %v1307_v18 = vmul.f32 1.442695, %v1303_v11 }
 0x3bc   : > { %v1311_v19 = vsel %vm897_vm0, %v2730_v17, 0.0 }
 0x3bd   : > { %2237 = vpow2.f32 %v1307_v18  ;;  %1312 = vadd.xlane.f32.xlu1 %v1311_v19 }
 0x3be   : > { %2239 = vpow2.f32 %v1178_v10 }
 0x3c0   : > { %v2734_v20 = vpop.eup %2235  ;;  %v1301_v14 = vpop.xlane.xlu0 %1300 }
 0x3c1   : > { %v1304_v21 = vsub.f32 %v2687_v24, %v1301_v14  ;;  %v1055_v16 = vsel %vm904_vm1, %v2734_v20, 0.0 }
 0x3c2   : > { %1056 = vadd.xlane.f32.xlu2 %v1055_v16  ;;  %v919_v9 = vpop.xlane.xlu2 %918 }
 0x3c3   : > { %v2739_v23 = vpop.eup %2237  ;;  %v1309_v25 = vmul.f32 1.442695, %v1304_v21  ;;  %2241 = vrcp.f32 %v919_v9 }
 0x3c4   : > { %v1314_v27 = vsel %vm897_vm0, %v2739_v23, 0.0  ;;  %v2743_v28 = vpop.eup %2239 }
 0x3c5   : > { %2243 = vpow2.f32 %v1309_v25  ;;  %1315 = vadd.xlane.f32.xlu1 %v1314_v27  ;;  %v1186_v31 = vsel %vm904_vm1, %v2743_v28, 0.0 }
 0x3c9   : > { %v2242_v29 = vpop.eup %2241 }
 0x3ca   : > { %v929_v24 = vmul.f32 %v2242_v29, %v2691_v26  ;;  %v1421_v29 = vld [vmem:[%s2484_s29 + $0x18] sm:$0xff] }
 0x3cb   : > { %v2746_v30 = vpop.eup %2243  ;;  %1447 = vmatpush.msra.mxu0 %v1421_v29 }
 0x3cc   : > { %2076 = vmatmul.msk.f32.vlgmr.msra.gmra.mxu2 %vm897_vm0, %v929_v24  ;;  %v1317_v32 = vsel %vm904_vm1, %v2746_v30, 0.0 }
 0x3cd   : > { %1187 = vadd.xlane.f32.xlu1 %v1186_v31  ;;  %v1331_v33 = vpop.permute.xlu1 %1330  ;;  %1318 = vadd.xlane.f32.xlu0 %v1317_v32  ;;  %v1418_v32 = vld [vmem:[%s2484_s29] sm:$0xff] }
 0x3ce   : > { %2105 = vmatpush.msk.msra.mxu2 %vm949_vm15, %v1331_v33 }
 0x3d0   : > { %v1051_v37 = vpop.xlane.xlu0 %1050  ;;  %1359 = vmatpush.msra.mxu2 %v2198_v34 }
 0x3d2   : > { %1360 = vmatpush.msra.mxu2 %v2199_v36 }
 0x3d8   : > { %v922_v26 = vpop.xlane.xlu0 %921 }
 0x3d9   : > { %2245 = vrcp.f32 %v922_v26 }
 0x3da   : > { %1199 = vrot.lane.b32.xlu2 %v2589_v22, %s2340_s18 }
 0x3df   : > { %v2246_v38 = vpop.eup %2245 }
 0x3e0   : > { %v930_v40 = vmul.f32 %v2246_v38, %v2703_v39  ;;  %v1054_v49 = vpop.xlane.xlu0 %1053 }
 0x3e2   : > { %2077 = vmatmul.msk.f32.gmra.mxu2 %vm897_vm0, %v930_v40  ;;  %v1182_v41 = vpop.xlane.xlu2 %1181 }
 0x3ea   : > { %v925_v42 = vpop.xlane.xlu2 %924 }
 0x3eb   : > { %2247 = vrcp.f32 %v925_v42 }
 0x3ec   : > { %2249 = vrcp.f32 %v1051_v37 }
 0x3ed   : > { %2251 = vpow2.f32 %v1176_v47 }
 0x3ee   : > { %2253 = vrcp.f32 %v1054_v49 }
 0x3f1   : > { %v2248_v45 = vpop.eup %2247 }
 0x3f2   : > { %v931_v46 = vmul.f32 %v2248_v45, %v2717_v51  ;;  %v2250_v22 = vpop.eup %2249 }
 0x3f3   : > { %v1061_v39 = vmul.f32 %v2250_v22, %v2696_v35  ;;  %v2252_v50 = vpop.eup %2251  ;;  %v2202_v55 = vpop.permute.xlu0 %2201 }
 0x3f4   : > { %2078 = vmatmul.msk.f32.gmra.mxu2 %vm897_vm0, %v931_v46  ;;  %v2254_v53 = vpop.eup %2253  ;;  %v1183_v54 = vsel %vm897_vm0, %v2252_v50, 0.0  ;;  %v2203_v59 = vunpack.i.l.bf16 %v2202_v55 }
 0x3f5   : > { %v1062_v63 = vmul.f32 %v2254_v53, %v2708_v44  ;;  %v2204_v44 = vunpack.i.h.bf16 %v2202_v55 }
 0x3fc   : > { %2086 = vmatmul.msk.f32.vlgmr.msrb.gmra.mxu2 %vm897_vm0, %v1061_v39 }
 0x403   : > { %1184 = vadd.xlane.f32.xlu2 %v1183_v54  ;;  %v2208_v54 = vld [vmem:[%s2987_s17] ss:$0 sm:$0xff] }
 0x404   : > { %2087 = vmatmul.msk.f32.gmra.mxu2 %vm897_vm0, %v1062_v63 }
 0x430   : > { %v1313_v52 = vpop.xlane.xlu1 %1312 }
 0x435   : > { %v1057_v51 = vpop.xlane.xlu2 %1056 }
 0x436   : > { %2255 = vrcp.f32 %v1057_v51 }
 0x437   : > { %2257 = vrcp.f32 %v1182_v41 }
 0x438   : > { %2259 = vrcp.f32 %v1313_v52  ;;  %v1316_v60 = vpop.xlane.xlu1 %1315 }
 0x439   : > { %2261 = vrcp.f32 %v1316_v60 }
 0x43c   : > { %v2256_v56 = vpop.eup %2255 }
 0x43d   : > { %v1200_v57 = vpop.permute.xlu2 %1199  ;;  %v1063_v35 = vmul.f32 %v2256_v56, %v2734_v20  ;;  %v2258_v58 = vpop.eup %2257 }
 0x43e   : > { %2095 = vmatpush.msk.msrb.mxu1 %vm949_vm15, %v1200_v57  ;;  %v1192_v61 = vmul.f32 %v2258_v58, %v2713_v48  ;;  %v2260_v62 = vpop.eup %2259 }
 0x43f   : > { %2088 = vmatmul.msk.f32.gmra.mxu2 %vm897_vm0, %v1063_v35  ;;  %v1323_v0 = vmul.f32 %v2260_v62, %v2730_v17  ;;  %v2262_v5 = vpop.eup %2261 }
 0x440   : > { %1228 = vmatpush.msrb.mxu1 %v2203_v59  ;;  %v1319_v1 = vpop.xlane.xlu0 %1318  ;;  %v1324_v2 = vmul.f32 %v2262_v5, %v2739_v23  ;;  %v1188_v17 = vpop.xlane.xlu1 %1187 }
 0x441   : > { %2263 = vrcp.f32 %v1319_v1 }
 0x442   : > { %1229 = vmatpush.msrb.mxu1 %v2204_v44 }
 0x443   : > { %2096 = vmatmul.msk.f32.vlgmr.msrb.gmra.mxu1 %vm897_vm0, %v1192_v61 }
 0x447   : > { %2106 = vmatmul.msk.f32.vlgmr.msra.gmra.mxu2 %vm897_vm0, %v1323_v0  ;;  %v2264_v6 = vpop.eup %2263 }
 0x448   : > { %v1325_v8 = vmul.f32 %v2264_v6, %v2746_v30  ;;  %v1419_v30 = vld [vmem:[%s2484_s29 + $0x8] sm:$0xff] }
 0x44f   : > { %2107 = vmatmul.msk.f32.gmra.mxu2 %vm897_vm0, %v1324_v2  ;;  %v969_v48 = vpop.f32.mrf.mxu2 }
 0x457   : > { %2108 = vmatmul.msk.f32.gmra.mxu2 %vm897_vm0, %v1325_v8 }
 0x465   : > { %v972_v11 = vpop.f32.mrf.mxu2 }
 0x476   : > { %v1185_v12 = vpop.xlane.xlu2 %1184 }
 0x477   : > { %2265 = vrcp.f32 %v1185_v12  ;;  %v975_v13 = vpop.f32.mrf.mxu2 }
 0x478   : > { %2267 = vrcp.f32 %v1188_v17 }
 0x47d   : > { %v2266_v18 = vpop.eup %2265 }
 0x47e   : > { %v1193_v19 = vmul.f32 %v2266_v18, %v2252_v50  ;;  %v2268_v20 = vpop.eup %2267  ;;  %v1547_v18 = vld [vmem:[%s2501_s19 + $0x18] sm:$0xff] }
 0x47f   : > { %v1100_v10 = vpop.f32.mrf.mxu2  ;;  %v1194_v14 = vmul.f32 %v2268_v20, %v2743_v28  ;;  %v1420_v28 = vld [vmem:[%s2484_s29 + $0x10] sm:$0xff]  ;;  %1573 = vmatpush.msra.mxu1 %v1547_v18  ;;  %v1544_v20 = vld [vmem:[%s2501_s19] sm:$0xff] }
 0x480   : > { %1374 = vrot.lane.b32.xlu1 %v1100_v10, %s2341_s27  ;;  %2097 = vmatmul.msk.f32.gmra.mxu1 %vm897_vm0, %v1193_v19  ;;  %v1546_v19 = vld [vmem:[%s2501_s19 + $0x10] sm:$0xff]  ;;  %v1545_v10 = vld [vmem:[%s2501_s19 + $0x8] sm:$0xff]  ;;  %s2988_s19 = scalar_lea.vmem %s2951_s7, %s2458_s25  ;;  %v1723_v18 = vld [vmem:[%s2515_s0 + $0x20] sm:$0xff] }
 0x481   : > { %1448 = vmatpush.msra.mxu0 %v1420_v28  ;;  %1574 = vmatpush.msra.mxu1 %v1546_v19 }
 0x483   : > { %1449 = vmatpush.msra.mxu0 %v1419_v30  ;;  %1575 = vmatpush.msra.mxu1 %v1545_v10 }
 0x485   : > { %1450 = vmatpush.msra.mxu0 %v1418_v32  ;;  %1576 = vmatpush.msra.mxu1 %v1544_v20  ;;  %v2210_v32 = vld [vmem:[%s2989_s3] ss:$0 sm:$0xff]  ;;  %v1722_v20 = vld [vmem:[%s2515_s0 + $0x18] sm:$0xff] }
 0x487   : > { %v1103_v21 = vpop.f32.mrf.mxu2 }
 0x488   : > { %1376 = vrot.lane.b32.xlu1 %v1103_v21, %s2341_s27  ;;  %2098 = vmatmul.msk.f32.gmra.mxu1 %vm897_vm0, %v1194_v14 }
 0x4c0   : > { %v1231_v16 = vpop.f32.mrf.mxu1 }
 0x4c1   : > { %1386 = vrot.lane.b32.xlu2 %v1231_v16, %s2342_s28 }
 0x4c2   : > { %v1106_v9 = vpop.f32.mrf.mxu2 }
 0x4ca   : > { %v1362_v23 = vpop.f32.mrf.mxu2 }
 0x4cb   : > { %1398 = vrot.lane.b32.xlu0 %v1362_v23, %s2343_s30 }
 0x4d2   : > { %v1365_v25 = vpop.f32.mrf.mxu2 }
 0x4d3   : > { %1400 = vrot.lane.b32.xlu1 %v1365_v25, %s2343_s30 }
 0x4da   : > { %v1368_v27 = vpop.f32.mrf.mxu2 }
 0x4db   : > { %1402 = vrot.lane.b32.xlu1 %v1368_v27, %s2343_s30 }
 0x4f2   : > { %v1375_v33 = vpop.permute.xlu1 %1374 }
 0x4f3   : > { %v1407_v36 = vsel %vm855_vm14, %v969_v48, %v1375_v33 }
 0x4fa   : > { %v1377_v40 = vpop.permute.xlu1 %1376 }
 0x4fb   : > { %v1408_v41 = vsel %vm855_vm14, %v972_v11, %v1377_v40 }
 0x4fd   : > { %v1234_v24 = vpop.f32.mrf.mxu1 }
 0x4fe   : > { %1388 = vrot.lane.b32.xlu2 %v1234_v24, %s2342_s28  ;;  %v2209_v24 = vld [vmem:[%s2988_s19] ss:$0 sm:$0xff] }
 0x505   : > { %v1237_v31 = vpop.f32.mrf.mxu1 }
 0x506   : > { %1378 = vrot.lane.b32.xlu2 %v1106_v9, %s2341_s27  ;;  %1390 = vrot.lane.b32.xlu0 %v1237_v31, %s2342_s28 }
 0x51b   : > { %v1387_v34 = vpop.permute.xlu2 %1386 }
 0x51c   : > { %v1411_v37 = vsel %vm1410_vm4, %v1407_v36, %v1387_v34 }
 0x53d   : > { %v1399_v26 = vpop.permute.xlu0 %1398 }
 0x53e   : > { %v1415_v38 = vsel %vm1414_vm5, %v1411_v37, %v1399_v26 }
 0x53f   : > { %2109 = vmatmul.msk.f32.vlgmr.msra.gmra.mxu0 %vm716_vm2, %v1415_v38 }
 0x545   : > { %v1401_v43 = vpop.permute.xlu1 %1400 }
 0x54d   : > { %v1403_v39 = vpop.permute.xlu1 %1402 }
 0x558   : > { %v1389_v42 = vpop.permute.xlu2 %1388 }
 0x559   : > { %v1412_v45 = vsel %vm1410_vm4, %v1408_v41, %v1389_v42 }
 0x55a   : > { %v1416_v46 = vsel %vm1414_vm5, %v1412_v45, %v1401_v43 }
 0x55b   : > { %2110 = vmatmul.msk.f32.gmra.mxu0 %vm716_vm2, %v1416_v46 }
 0x560   : > { %v1379_v47 = vpop.permute.xlu2 %1378 }
 0x561   : > { %v1409_v49 = vsel %vm855_vm14, %v975_v13, %v1379_v47 }
 0x578   : > { %v1391_v22 = vpop.permute.xlu0 %1390 }
 0x579   : > { %v1413_v50 = vsel %vm1410_vm4, %v1409_v49, %v1391_v22 }
 0x57a   : > { %v1417_v53 = vsel %vm1414_vm5, %v1413_v50, %v1403_v39  ;;  %vm1731_vm5 = vcmask 523264  }
 0x57b   : > { %2111 = vmatmul.msk.f32.gmra.mxu0 %vm716_vm2, %v1417_v53 }
 0x5bc   : > { %v1452_v63 = vpop.f32.mrf.mxu0 }
 0x5bd   : > { %v1453_v51 = vadd.f32 %v2208_v54, %v1452_v63 }
 0x5bf   : > { %v2803_v52 = vadd.f32 %v1453_v51, %v2527_v3 }
 0x5c1   : > { %v1466_v55 = vsel %vm716_vm2, %v2803_v52, 0.0 }
 0x5c2   : > { %1467 = vadd.xlane.f32.xlu2 %v1466_v55 }
 0x5d8   : > { %v1455_v56 = vpop.f32.mrf.mxu0 }
 0x5d9   : > { %v1456_v57 = vadd.f32 %v2208_v54, %v1455_v56 }
 0x5db   : > { %v2808_v35 = vadd.f32 %v1456_v57, %v2537_v7 }
 0x5dd   : > { %v1469_v58 = vsel %vm716_vm2, %v2808_v35, 0.0 }
 0x5de   : > { %1470 = vadd.xlane.f32.xlu0 %v1469_v58 }
 0x5f8   : > { %v1458_v59 = vpop.f32.mrf.mxu0 }
 0x5f9   : > { %v1459_v44 = vadd.f32 %v2208_v54, %v1458_v59 }
 0x5fb   : > { %v2813_v60 = vadd.f32 %v1459_v44, %v2530_v4 }
 0x5fd   : > { %v1472_v3 = vsel %vm723_vm3, %v2813_v60, 0.0 }
 0x5fe   : > { %1473 = vadd.xlane.f32.xlu1 %v1472_v3 }
 0x635   : > { %v1468_v61 = vpop.xlane.xlu2 %1467 }
 0x636   : > { %v1475_v62 = vmul.f32 %v1468_v61, %v2541_v15  ;;  %v2856_v61 = vld [vmem:[%s685_s15] ss:$0 sm:$0xff] }
 0x638   : > { %v1478_v0 = vsub.f32 %v2803_v52, %v1475_v62 }
 0x63a   : > { %v1481_v7 = vmul.f32 %v1478_v0, %v1478_v0 }
 0x63c   : > { %v1484_v1 = vsel %vm716_vm2, %v1481_v7, 0.0 }
 0x63d   : > { %1485 = vadd.xlane.f32.xlu2 %v1484_v1 }
 0x651   : > { %v1471_v5 = vpop.xlane.xlu0 %1470 }
 0x652   : > { %v1476_v4 = vmul.f32 %v1471_v5, %v2541_v15 }
 0x654   : > { %v1479_v2 = vsub.f32 %v2808_v35, %v1476_v4  ;;  %v1726_v4 = vld [vmem:[%s2515_s0 + $0x38] sm:$0xff] }
 0x655   : > { %1749 = vmatpush.msra.mxu3 %v1726_v4 }
 0x656   : > { %v1482_v6 = vmul.f32 %v1479_v2, %v1479_v2 }
 0x658   : > { %v1487_v8 = vsel %vm716_vm2, %v1482_v6, 0.0 }
 0x659   : > { %1488 = vadd.xlane.f32.xlu0 %v1487_v8  ;;  %v1725_v8 = vld [vmem:[%s2515_s0 + $0x30] sm:$0xff] }
 0x65a   : > { %1750 = vmatpush.msra.mxu3 %v1725_v8 }
 0x671   : > { %v1474_v48 = vpop.xlane.xlu1 %1473 }
 0x672   : > { %v1477_v11 = vmul.f32 %v1474_v48, %v2541_v15 }
 0x674   : > { %v2825_v12 = vsub.f32 %v2813_v60, %v1477_v11 }
 0x676   : > { %v1483_v13 = vmul.f32 %v2825_v12, %v2825_v12 }
 0x678   : > { %v1490_v17 = vsel %vm723_vm3, %v1483_v13, 0.0 }
 0x679   : > { %1491 = vadd.xlane.f32.xlu1 %v1490_v17 }
 0x6b0   : > { %v1486_v14 = vpop.xlane.xlu2 %1485 }
 0x6b1   : > { %v1493_v21 = vmul.f32 %v1486_v14, %v2541_v15 }
 0x6b3   : > { %v1496_v16 = vadd.f32 1e-12, %v1493_v21  ;;  %v1721_v21 = vld [vmem:[%s2515_s0 + $0x10] sm:$0xff] }
 0x6b5   : > { %2269 = vrsqrt.f32 %v1496_v16  ;;  %vm1505_vm7 = vweird.f32 %v1496_v16 }
 0x6bb   : > { %v2270_v9 = vpop.eup %2269 }
 0x6bc   : > { %v1500_v23 = vmul.f32 %v2270_v9, %v1496_v16  ;;  %vm1506_vm6 = vweird.f32 %v2270_v9 }
 0x6bd   : > { %vm1507_vm8 = vmor %vm1505_vm7, %vm1506_vm6 }
 0x6be   : > { %v1501_v25 = vmul.f32 %v2270_v9, %v1500_v23  ;;  %v1720_v23 = vld [vmem:[%s2515_s0 + $0x8] sm:$0xff] }
 0x6c0   : > { %v1502_v27 = vmul.f32 0.5, %v1501_v25 }
 0x6c2   : > { %v1503_v29 = vsub.f32 1.5, %v1502_v27  ;;  %v1719_v27 = vld [vmem:[%s2515_s0] sm:$0xff] }
 0x6c4   : > { %v1504_v28 = vmul.f32 %v2270_v9, %v1503_v29 }
 0x6c6   : > { %v1508_v30 = vsel %vm1507_vm8, %v2270_v9, %v1504_v28 }
 0x6c7   : > { %v1529_v31 = vmul.f32 %v1508_v30, %v1478_v0 }
 0x6c9   : > { %v1535_v33 = vmul.f32 %v2209_v24, %v1529_v31 }
 0x6cb   : > { %v1541_v34 = vadd.f32 %v2210_v32, %v1535_v33 }
 0x6cc   : > { %v1489_v36 = vpop.xlane.xlu0 %1488 }
 0x6cd   : > { %v1494_v37 = vmul.f32 %v1489_v36, %v2541_v15  ;;  %2112 = vmatmul.msk.f32.vlgmr.msra.gmra.mxu1 %vm716_vm2, %v1541_v34 }
 0x6cf   : > { %v1497_v26 = vadd.f32 1e-12, %v1494_v37 }
 0x6d1   : > { %2271 = vrsqrt.f32 %v1497_v26  ;;  %vm1515_vm10 = vweird.f32 %v1497_v26 }
 0x6d7   : > { %v2272_v38 = vpop.eup %2271 }
 0x6d8   : > { %v1510_v40 = vmul.f32 %v2272_v38, %v1497_v26  ;;  %vm1516_vm9 = vweird.f32 %v2272_v38 }
 0x6d9   : > { %vm1517_vm11 = vmor %vm1515_vm10, %vm1516_vm9 }
 0x6da   : > { %v1511_v41 = vmul.f32 %v2272_v38, %v1510_v40 }
 0x6dc   : > { %v1512_v42 = vmul.f32 0.5, %v1511_v41 }
 0x6de   : > { %v1513_v43 = vsub.f32 1.5, %v1512_v42 }
 0x6e0   : > { %v1514_v45 = vmul.f32 %v2272_v38, %v1513_v43 }
 0x6e2   : > { %v1518_v46 = vsel %vm1517_vm11, %v2272_v38, %v1514_v45 }
 0x6e3   : > { %v1530_v47 = vmul.f32 %v1518_v46, %v1479_v2 }
 0x6e5   : > { %v1536_v49 = vmul.f32 %v2209_v24, %v1530_v47 }
 0x6e7   : > { %v1542_v22 = vadd.f32 %v2210_v32, %v1536_v49 }
 0x6e9   : > { %2113 = vmatmul.msk.f32.gmra.mxu1 %vm716_vm2, %v1542_v22 }
 0x6ec   : > { %v1492_v39 = vpop.xlane.xlu1 %1491 }
 0x6ed   : > { %v1495_v50 = vmul.f32 %v1492_v39, %v2541_v15 }
 0x6ef   : > { %v1498_v53 = vadd.f32 1e-12, %v1495_v50 }
 0x6f1   : > { %2273 = vrsqrt.f32 %v1498_v53  ;;  %vm1525_vm13 = vweird.f32 %v1498_v53 }
 0x6f7   : > { %v2274_v54 = vpop.eup %2273 }
 0x6f8   : > { %v1520_v63 = vmul.f32 %v2274_v54, %v1498_v53  ;;  %vm1526_vm12 = vweird.f32 %v2274_v54 }
 0x6f9   : > { %vm1527_vm14 = vmor %vm1525_vm13, %vm1526_vm12 }
 0x6fa   : > { %v1521_v51 = vmul.f32 %v2274_v54, %v1520_v63 }
 0x6fc   : > { %v1522_v55 = vmul.f32 0.5, %v1521_v51 }
 0x6fe   : > { %v1523_v56 = vsub.f32 1.5, %v1522_v55 }
 0x700   : > { %v1524_v57 = vmul.f32 %v2274_v54, %v1523_v56 }
 0x702   : > { %v1528_v58 = vsel %vm1527_vm14, %v2274_v54, %v1524_v57 }
 0x703   : > { %v1531_v59 = vmul.f32 %v1528_v58, %v2825_v12  ;;  %v1724_v12 = vld [vmem:[%s2515_s0 + $0x28] sm:$0xff] }
 0x704   : > { %1751 = vmatpush.msra.mxu3 %v1724_v12 }
 0x705   : > { %v1537_v44 = vmul.f32 %v2209_v24, %v1531_v59 }
 0x706   : > { %1752 = vmatpush.msra.mxu3 %v1723_v18 }
 0x707   : > { %v1543_v3 = vadd.f32 %v2210_v32, %v1537_v44 }
 0x708   : > { %1753 = vmatpush.msra.mxu3 %v1722_v20 }
 0x709   : > { %2114 = vmatmul.msk.f32.gmra.mxu1 %vm716_vm2, %v1543_v3 }
 0x70a   : > { %1754 = vmatpush.msra.mxu3 %v1721_v21 }
 0x70c   : > { %1755 = vmatpush.msra.mxu3 %v1720_v23 }
 0x70e   : > { %1756 = vmatpush.msra.mxu3 %v1719_v27 }
 0x74a   : > { %v1578_v62 = vpop.f32.mrf.mxu1 }
 0x74b   : > { %v2859_v0 = vadd.f32 %v2856_v61, %v1578_v62 }
 0x74d   : > { %v1590_v7 = vmul.f32 0.70710677, %v2859_v0  ;;  %v1587_v4 = vmul.f32 0.5, %v2859_v0 }
 0x74f   : > { %v1593_v1 = vmul.f32 %v1590_v7, %v1590_v7 }
 0x751   : > { %v1594_v5 = vmin.f32 %v1593_v1, 16.0 }
 0x753   : > { %v1595_v2 = vmul.f32 2.1237322e-06, %v1594_v5  ;;  %v1606_v6 = vmul.f32 3.8918573e-05, %v1594_v5 }
 0x755   : > { %v1596_v48 = vadd.f32 0.00028619796, %v1595_v2  ;;  %v1607_v11 = vadd.f32 0.001143296, %v1606_v6 }
 0x757   : > { %v1597_v13 = vmul.f32 %v1596_v48, %v1594_v5  ;;  %v1608_v17 = vmul.f32 %v1607_v11, %v1594_v5 }
 0x759   : > { %v1598_v19 = vadd.f32 0.0036580483, %v1597_v13  ;;  %v1609_v10 = vadd.f32 0.014752088, %v1608_v17 }
 0x75b   : > { %v1610_v14 = vmul.f32 %v1609_v10, %v1594_v5  ;;  %v1599_v16 = vmul.f32 %v1598_v19, %v1594_v5 }
 0x75d   : > { %v1611_v9 = vadd.f32 0.112945676, %v1610_v14  ;;  %v1600_v29 = vadd.f32 0.05243302, %v1599_v16 }
 0x75f   : > { %v1612_v25 = vmul.f32 %v1611_v9, %v1594_v5  ;;  %v1601_v30 = vmul.f32 %v1600_v29, %v1594_v5 }
 0x761   : > { %v1613_v28 = vadd.f32 0.4994258, %v1612_v25  ;;  %v1602_v34 = vadd.f32 0.18741608, %v1601_v30 }
 0x763   : > { %v1614_v24 = vmul.f32 %v1613_v28, %v1594_v5  ;;  %v1603_v38 = vmul.f32 %v1602_v34, %v1594_v5 }
 0x765   : > { %v1615_v31 = vadd.f32 1.0, %v1614_v24  ;;  %v1604_v46 = vadd.f32 1.1283791, %v1603_v38 }
 0x766   : > { %v1581_v32 = vpop.f32.mrf.mxu1 }
 0x767   : > { %2275 = vrcp.f32 %v1615_v31  ;;  %v2871_v33 = vadd.f32 %v2856_v61, %v1581_v32  ;;  %v1625_v47 = vand.u32 2147483647, %v1615_v31  ;;  %v1627_v49 = vand.u32 2147483648, %v1615_v31 }
 0x768   : > { %vm1621_vm0 = vweird.f32 %v1615_v31  ;;  %v1605_v51 = vmul.f32 %v1604_v46, %v1590_v7 }
 0x769   : > { %v2874_v36 = vmul.f32 0.70710677, %v2871_v33  ;;  %v1628_v55 = vor.u32 1.1754944e-38, %v1627_v49  ;;  %vm1626_vm4 = vcmp.eq.f32.partialorder %v1625_v47, 8.507059e+37  ;;  %v1588_v47 = vmul.f32 0.5, %v2871_v33 }
 0x76b   : > { %v1633_v37 = vmul.f32 %v2874_v36, %v2874_v36 }
 0x76d   : > { %v2276_v26 = vpop.eup %2275  ;;  %v1634_v41 = vmin.f32 %v1633_v37, 16.0 }
 0x76e   : > { %v1617_v40 = vmul.f32 %v2276_v26, %v1615_v31  ;;  %vm1622_vm15 = vweird.f32 %v2276_v26 }
 0x76f   : > { %v1635_v43 = vmul.f32 2.1237322e-06, %v1634_v41  ;;  %v1646_v45 = vmul.f32 3.8918573e-05, %v1634_v41  ;;  %vm1623_vm1 = vmor %vm1621_vm0, %vm1622_vm15 }
 0x770   : > { %v1618_v42 = vsub.f32 1.0, %v1617_v40 }
 0x771   : > { %v1636_v39 = vadd.f32 0.00028619796, %v1635_v43  ;;  %v1647_v50 = vadd.f32 0.001143296, %v1646_v45 }
 0x772   : > { %v1619_v22 = vmul.f32 %v2276_v26, %v1618_v42 }
 0x773   : > { %v1637_v54 = vmul.f32 %v1636_v39, %v1634_v41  ;;  %v1648_v63 = vmul.f32 %v1647_v50, %v1634_v41 }
 0x774   : > { %v1620_v53 = vadd.f32 %v2276_v26, %v1619_v22 }
 0x775   : > { %v1638_v57 = vadd.f32 0.0036580483, %v1637_v54  ;;  %v1649_v58 = vadd.f32 0.014752088, %v1648_v63 }
 0x776   : > { %v1624_v56 = vsel %vm1623_vm1, %v2276_v26, %v1620_v53 }
 0x777   : > { %v1629_v59 = vsel %vm1626_vm4, %v1628_v55, %v1624_v56  ;;  %v1650_v3 = vmul.f32 %v1649_v58, %v1634_v41  ;;  %v1639_v1 = vmul.f32 %v1638_v57, %v1634_v41 }
 0x778   : > { %v1630_v44 = vmul.f32 %v1629_v59, %v1605_v51 }
 0x779   : > { %v1651_v5 = vadd.f32 0.112945676, %v1650_v3  ;;  %v1640_v48 = vadd.f32 0.05243302, %v1639_v1 }
 0x77a   : > { %v2115_v62 = vclamps-f32 %v1630_v44, 1.0 }
 0x77b   : > { %v1652_v6 = vmul.f32 %v1651_v5, %v1634_v41  ;;  %v1641_v12 = vmul.f32 %v1640_v48, %v1634_v41 }
 0x77c   : > { %v1713_v2 = vadd.f32 1.0, %v2115_v62 }
 0x77d   : > { %v1653_v7 = vadd.f32 0.4994258, %v1652_v6  ;;  %v1642_v17 = vadd.f32 0.18741608, %v1641_v12 }
 0x77e   : > { %v1716_v8 = vmul.f32 %v1713_v2, %v1587_v4 }
 0x77f   : > { %v1654_v11 = vmul.f32 %v1653_v7, %v1634_v41  ;;  %v1643_v20 = vmul.f32 %v1642_v17, %v1634_v41  ;;  %v2212_v17 = vld [vmem:[%s693_s23] ss:$0 sm:$0xff] }
 0x780   : > { %2118 = vmatmul.msk.f32.vlgmr.msra.gmra.mxu3 %vm1731_vm5, %v1716_v8 }
 0x781   : > { %v1655_v13 = vadd.f32 1.0, %v1654_v11  ;;  %v1644_v23 = vadd.f32 1.1283791, %v1643_v20 }
 0x783   : > { %2277 = vrcp.f32 %v1655_v13  ;;  %v1665_v25 = vand.u32 2147483647, %v1655_v13  ;;  %v1667_v27 = vand.u32 2147483648, %v1655_v13  ;;  %vm1661_vm7 = vweird.f32 %v1655_v13 }
 0x784   : > { %v1645_v32 = vmul.f32 %v1644_v23, %v2874_v36 }
 0x785   : > { %v1668_v34 = vor.u32 1.1754944e-38, %v1667_v27  ;;  %vm1666_vm9 = vcmp.eq.f32.partialorder %v1665_v25, 8.507059e+37 }
 0x786   : > { %v1584_v18 = vpop.f32.mrf.mxu1 }
 0x787   : > { %v2881_v19 = vadd.f32 %v2856_v61, %v1584_v18 }
 0x789   : > { %v1592_v10 = vmul.f32 0.70710677, %v2881_v19  ;;  %v2278_v0 = vpop.eup %2277  ;;  %v1589_v11 = vmul.f32 0.5, %v2881_v19 }
 0x78a   : > { %v1657_v14 = vmul.f32 %v2278_v0, %v1655_v13  ;;  %vm1662_vm6 = vweird.f32 %v2278_v0 }
 0x78b   : > { %v1673_v21 = vmul.f32 %v1592_v10, %v1592_v10  ;;  %vm1663_vm8 = vmor %vm1661_vm7, %vm1662_vm6 }
 0x78c   : > { %v1658_v16 = vsub.f32 1.0, %v1657_v14 }
 0x78d   : > { %v1674_v9 = vmin.f32 %v1673_v21, 16.0 }
 0x78e   : > { %v1659_v29 = vmul.f32 %v2278_v0, %v1658_v16 }
 0x78f   : > { %v1675_v28 = vmul.f32 2.1237322e-06, %v1674_v9  ;;  %v1686_v24 = vmul.f32 3.8918573e-05, %v1674_v9 }
 0x790   : > { %v1660_v30 = vadd.f32 %v2278_v0, %v1659_v29 }
 0x791   : > { %v1676_v31 = vadd.f32 0.00028619796, %v1675_v28  ;;  %v1687_v61 = vadd.f32 0.001143296, %v1686_v24 }
 0x792   : > { %v1664_v37 = vsel %vm1663_vm8, %v2278_v0, %v1660_v30 }
 0x793   : > { %v1677_v26 = vmul.f32 %v1676_v31, %v1674_v9  ;;  %v1688_v38 = vmul.f32 %v1687_v61, %v1674_v9  ;;  %v1669_v40 = vsel %vm1666_vm9, %v1668_v34, %v1664_v37 }
 0x794   : > { %v1670_v41 = vmul.f32 %v1669_v40, %v1645_v32 }
 0x795   : > { %v1689_v42 = vadd.f32 0.014752088, %v1688_v38  ;;  %v1678_v43 = vadd.f32 0.0036580483, %v1677_v26 }
 0x796   : > { %v2116_v46 = vclamps-f32 %v1670_v41, 1.0 }
 0x797   : > { %v1690_v45 = vmul.f32 %v1689_v42, %v1674_v9  ;;  %v1679_v39 = vmul.f32 %v1678_v43, %v1674_v9 }
 0x798   : > { %v1714_v22 = vadd.f32 1.0, %v2116_v46 }
 0x799   : > { %v1691_v49 = vadd.f32 0.112945676, %v1690_v45  ;;  %v1680_v54 = vadd.f32 0.05243302, %v1679_v39 }
 0x79a   : > { %v1717_v53 = vmul.f32 %v1714_v22, %v1588_v47 }
 0x79b   : > { %v1692_v50 = vmul.f32 %v1691_v49, %v1674_v9  ;;  %v1681_v55 = vmul.f32 %v1680_v54, %v1674_v9 }
 0x79c   : > { %2119 = vmatmul.msk.f32.gmra.mxu3 %vm1731_vm5, %v1717_v53 }
 0x79d   : > { %v1693_v36 = vadd.f32 0.4994258, %v1692_v50  ;;  %v1682_v56 = vadd.f32 0.18741608, %v1681_v55 }
 0x79f   : > { %v1694_v63 = vmul.f32 %v1693_v36, %v1674_v9  ;;  %v1683_v58 = vmul.f32 %v1682_v56, %v1674_v9 }
 0x7a1   : > { %v1695_v51 = vadd.f32 1.0, %v1694_v63  ;;  %v1684_v33 = vadd.f32 1.1283791, %v1683_v58 }
 0x7a3   : > { %2279 = vrcp.f32 %v1695_v51  ;;  %v1707_v3 = vand.u32 2147483648, %v1695_v51  ;;  %v1705_v1 = vand.u32 2147483647, %v1695_v51  ;;  %vm1701_vm11 = vweird.f32 %v1695_v51 }
 0x7a4   : > { %v1685_v2 = vmul.f32 %v1684_v33, %v1592_v10 }
 0x7a5   : > { %v1708_v4 = vor.u32 1.1754944e-38, %v1707_v3  ;;  %vm1706_vm13 = vcmp.eq.f32.partialorder %v1705_v1, 8.507059e+37 }
 0x7a9   : > { %v2280_v57 = vpop.eup %2279 }
 0x7aa   : > { %v1697_v59 = vmul.f32 %v2280_v57, %v1695_v51  ;;  %vm1702_vm10 = vweird.f32 %v2280_v57 }
 0x7ab   : > { %vm1703_vm12 = vmor %vm1701_vm11, %vm1702_vm10 }
 0x7ac   : > { %v1698_v44 = vsub.f32 1.0, %v1697_v59 }
 0x7ae   : > { %v1699_v62 = vmul.f32 %v2280_v57, %v1698_v44 }
 0x7b0   : > { %v1700_v5 = vadd.f32 %v2280_v57, %v1699_v62 }
 0x7b2   : > { %v1704_v6 = vsel %vm1703_vm12, %v2280_v57, %v1700_v5 }
 0x7b3   : > { %v1709_v8 = vsel %vm1706_vm13, %v1708_v4, %v1704_v6 }
 0x7b4   : > { %v1710_v48 = vmul.f32 %v1709_v8, %v1685_v2 }
 0x7b6   : > { %v2117_v7 = vclamps-f32 %v1710_v48, 1.0 }
 0x7b8   : > { %v1715_v12 = vadd.f32 1.0, %v2117_v7 }
 0x7ba   : > { %v1718_v13 = vmul.f32 %v1715_v12, %v1589_v11 }
 0x7bc   : > { %2120 = vmatmul.msk.f32.gmra.mxu3 %vm1731_vm5, %v1718_v13 }
 0x803   : > { %v1758_v18 = vpop.f32.mrf.mxu3 }
 0x804   : > { %v1759_v0 = vadd.f32 %v2212_v17, %v1758_v18 }
 0x806   : > { %v1767_v10 = vadd.f32 %v1759_v0, %v2803_v52 }
 0x81f   : > { %v1761_v20 = vpop.f32.mrf.mxu3 }
 0x820   : > { %v1762_v14 = vadd.f32 %v2212_v17, %v1761_v20 }
 0x822   : > { %v1768_v21 = vadd.f32 %v1762_v14, %v2808_v35 }
 0x83e   : > { %1773 = sbr.rel (%p2121_p8) target bundleno = 2118 (0x846), region = 88 }
 0x83f   : > { %v1764_v16 = vpop.f32.mrf.mxu3 }
 0x840   : > { %v1765_v9 = vadd.f32 %v2212_v17, %v1764_v16 }
 0x842   : > { %v1769_v19 = vadd.f32 %v1765_v9, %v2813_v60 }
 0x843   : > { %1774 = vst.msk [vmem:[%s2520_s2] sm:$0xff] %vm716_vm2, %v1767_v10 }
 0x844   : > { %1775 = vst.msk [vmem:[%s2520_s2 + $0x8] sm:$0xff] %vm716_vm2, %v1768_v21 }
 0x845   : > { %1776 = vst.msk [vmem:[%s2520_s2 + $0x10] sm:$0x1] %vm723_vm3, %v1769_v19 }
 0x846 PF: > { %s2991_s25 = sld [smem:[#allocation2_spill]] }
 0x84c   : > { %p2122_p9 = scmp.ne.s32.totalorder %s2991_s25, 1 }
 0x84d   : > { %s2992_s18 = sld [smem:[#allocation12_spill]] (!%p2122_p9) }
 0x84e   : > { %1780 = sbr.rel (%p2122_p9) target bundleno = 2416 (0x970), region = 92  ;;  %s2993_s30 = sld [smem:[#allocation13_spill]] (!%p2122_p9) }
 0x853   : > { %v1783_v52 = vsel %vm716_vm2, %v1767_v10, 0.0  ;;  %v1789_v35 = vsel %vm723_vm3, %v1769_v19, 0.0  ;;  %v1786_v60 = vsel %vm716_vm2, %v1768_v21, 0.0  ;;  %v2281_v57 = vld [vmem:[%s2992_s18] ss:$0 sm:$0xff] }
 0x854   : > { %1784 = vadd.xlane.f32.xlu0 %v1783_v52  ;;  %1790 = vadd.xlane.f32.xlu1 %v1789_v35 }
 0x85c   : > { %1787 = vadd.xlane.f32.xlu0 %v1786_v60 }
 0x8c7   : > { %v1785_v23 = vpop.xlane.xlu0 %1784  ;;  %v1791_v28 = vpop.xlane.xlu1 %1790 }
 0x8c8   : > { %v1792_v25 = vmul.f32 %v1785_v23, %v2541_v15  ;;  %v1794_v61 = vmul.f32 %v1791_v28, %v2541_v15 }
 0x8ca   : > { %v1795_v27 = vsub.f32 %v1767_v10, %v1792_v25  ;;  %v1797_v34 = vsub.f32 %v1769_v19, %v1794_v61 }
 0x8cc   : > { %v1798_v29 = vmul.f32 %v1795_v27, %v1795_v27  ;;  %v1800_v38 = vmul.f32 %v1797_v34, %v1797_v34 }
 0x8ce   : > { %v1801_v24 = vsel %vm716_vm2, %v1798_v29, 0.0  ;;  %v1807_v40 = vsel %vm723_vm3, %v1800_v38, 0.0 }
 0x8cf   : > { %1802 = vadd.xlane.f32.xlu1 %v1801_v24  ;;  %v1788_v30 = vpop.xlane.xlu0 %1787 }
 0x8d0   : > { %v1793_v31 = vmul.f32 %v1788_v30, %v2541_v15 }
 0x8d2   : > { %v1796_v32 = vsub.f32 %v1768_v21, %v1793_v31 }
 0x8d4   : > { %v1799_v37 = vmul.f32 %v1796_v32, %v1796_v32 }
 0x8d6   : > { %v1804_v26 = vsel %vm716_vm2, %v1799_v37, 0.0 }
 0x8d7   : > { %1805 = vadd.xlane.f32.xlu2 %v1804_v26 }
 0x8df   : > { %1808 = vadd.xlane.f32.xlu2 %v1807_v40 }
 0x942   : > { %v1803_v41 = vpop.xlane.xlu1 %1802 }
 0x943   : > { %v1810_v42 = vmul.f32 %v1803_v41, %v2541_v15 }
 0x945   : > { %v1813_v43 = vadd.f32 1e-12, %v1810_v42 }
 0x947   : > { %2283 = vrsqrt.f32 %v1813_v43  ;;  %vm1822_vm15 = vweird.f32 %v1813_v43 }
 0x94a   : > { %v1806_v45 = vpop.xlane.xlu2 %1805 }
 0x94b   : > { %v1811_v46 = vmul.f32 %v1806_v45, %v2541_v15 }
 0x94d   : > { %v2284_v47 = vpop.eup %2283  ;;  %v1814_v49 = vadd.f32 1e-12, %v1811_v46 }
 0x94e   : > { %v1817_v22 = vmul.f32 %v2284_v47, %v1813_v43  ;;  %vm1823_vm14 = vweird.f32 %v2284_v47 }
 0x94f   : > { %2285 = vrsqrt.f32 %v1814_v49  ;;  %vm1824_vm0 = vmor %vm1822_vm15, %vm1823_vm14  ;;  %vm1832_vm4 = vweird.f32 %v1814_v49 }
 0x950   : > { %v1818_v39 = vmul.f32 %v2284_v47, %v1817_v22 }
 0x952   : > { %v1819_v50 = vmul.f32 0.5, %v1818_v39  ;;  %v1809_v53 = vpop.xlane.xlu2 %1808 }
 0x953   : > { %v1812_v36 = vmul.f32 %v1809_v53, %v2541_v15  ;;  %v2282_v15 = vld [vmem:[%s2993_s30] ss:$0 sm:$0xff] }
 0x954   : > { %v1820_v54 = vsub.f32 1.5, %v1819_v50 }
 0x955   : > { %v2286_v63 = vpop.eup %2285  ;;  %v1815_v51 = vadd.f32 1e-12, %v1812_v36 }
 0x956   : > { %v1821_v55 = vmul.f32 %v2284_v47, %v1820_v54  ;;  %v1827_v56 = vmul.f32 %v2286_v63, %v1814_v49  ;;  %vm1833_vm1 = vweird.f32 %v2286_v63 }
 0x957   : > { %2287 = vrsqrt.f32 %v1815_v51  ;;  %vm1834_vm5 = vmor %vm1832_vm4, %vm1833_vm1  ;;  %vm1842_vm7 = vweird.f32 %v1815_v51 }
 0x958   : > { %v1825_v58 = vsel %vm1824_vm0, %v2284_v47, %v1821_v55  ;;  %v1828_v59 = vmul.f32 %v2286_v63, %v1827_v56 }
 0x959   : > { %v1846_v44 = vmul.f32 %v1825_v58, %v1795_v27 }
 0x95a   : > { %v1829_v3 = vmul.f32 0.5, %v1828_v59 }
 0x95b   : > { %v1852_v33 = vmul.f32 %v2281_v57, %v1846_v44 }
 0x95c   : > { %v1830_v62 = vsub.f32 1.5, %v1829_v3 }
 0x95d   : > { %v2288_v1 = vpop.eup %2287  ;;  %v1858_v5 = vadd.f32 %v2282_v15, %v1852_v33 }
 0x95e   : > { %v1831_v4 = vmul.f32 %v2286_v63, %v1830_v62  ;;  %v1837_v2 = vmul.f32 %v2288_v1, %v1815_v51  ;;  %vm1843_vm6 = vweird.f32 %v2288_v1 }
 0x95f   : > { %1861 = vst.msk [vmem:[%s2520_s2] sm:$0xff] %vm716_vm2, %v1858_v5  ;;  %vm1844_vm8 = vmor %vm1842_vm7, %vm1843_vm6 }
 0x960   : > { %v1835_v6 = vsel %vm1834_vm5, %v2286_v63, %v1831_v4  ;;  %v1838_v8 = vmul.f32 %v2288_v1, %v1837_v2 }
 0x961   : > { %v1847_v48 = vmul.f32 %v1835_v6, %v1796_v32 }
 0x962   : > { %v1839_v7 = vmul.f32 0.5, %v1838_v8 }
 0x963   : > { %v1853_v11 = vmul.f32 %v2281_v57, %v1847_v48 }
 0x964   : > { %v1840_v12 = vsub.f32 1.5, %v1839_v7 }
 0x965   : > { %v1859_v13 = vadd.f32 %v2282_v15, %v1853_v11 }
 0x966   : > { %v1841_v17 = vmul.f32 %v2288_v1, %v1840_v12 }
 0x967   : > { %1862 = vst.msk [vmem:[%s2520_s2 + $0x8] sm:$0xff] %vm716_vm2, %v1859_v13 }
 0x968   : > { %v1845_v18 = vsel %vm1844_vm8, %v2288_v1, %v1841_v17 }
 0x969   : > { %v1848_v0 = vmul.f32 %v1845_v18, %v1797_v34 }
 0x96b   : > { %v1854_v10 = vmul.f32 %v2281_v57, %v1848_v0 }
 0x96d   : > { %v1860_v20 = vadd.f32 %v2282_v15, %v1854_v10 }
 0x96f   : > { %1863 = vst.msk [vmem:[%s2520_s2 + $0x10] sm:$0x1] %vm723_vm3, %v1860_v20 }
 0x970 PF: > { %s2994_s29 = sld [smem:[#allocation5_spill]] }
 0x971   : > { %s2995_s18 = sld [smem:[#allocation3_spill]] }
 0x972   : > { %s2996_s19 = sld [smem:[#allocation4_spill]] }
 0x973   : > { %s2997_s20 = sld [smem:[#allocation6_spill]] }
 0x974   : > { %s2998_s21 = sld [smem:[#allocation7_spill]] }
 0x976   : > { %s25_s22 = sadd.s32 1, %s2994_s29  }
 0x977   : > { %p22_p10 = scmp.ge.s32.totalorder %s25_s22, 6  }
 0x979   :  { %24 = sbr.rel (!%p22_p10) target bundleno = 8 (0x8), region = 158 }

</bundles_post_ra>
